<compile_context>
chip_gen: v5e
topology: v5e:2x2
jax: 0.10.0
libtpu: 0.0.40
codegen_flags: <defaults>
</compile_context>

<pallas_src>
import jax
import jax.numpy as jnp
from jax.experimental import pallas as pl
from jax.experimental.pallas import tpu as pltpu


def _round_up(x, m):
    return ((x + m - 1) // m) * m


def _im2text_kernel(x_ref, w1_ref, b1_ref, w2_ref, b2_ref, w3_ref, b3_ref, o_ref):
    """Fused 3-layer MLP on one (TM, E) row tile.

    x_ref : (TM, E)    f32
    wK_ref: (in, out)  bf16   (pre-transposed: kernel computes h @ wK)
    bK_ref: (1, out)   f32
    o_ref : (TM, O)    f32
    """
    x = x_ref[...]

    # layers[0]: Linear -> (Dropout = identity) -> ReLU
    h = jnp.dot(x.astype(jnp.bfloat16), w1_ref[...],
                preferred_element_type=jnp.float32) + b1_ref[...]
    h = jnp.maximum(h, 0.0)

    # layers[1]: Linear -> (Dropout = identity) -> ReLU
    h = jnp.dot(h.astype(jnp.bfloat16), w2_ref[...],
                preferred_element_type=jnp.float32) + b2_ref[...]
    h = jnp.maximum(h, 0.0)

    # fc_out: Linear
    y = jnp.dot(h.astype(jnp.bfloat16), w3_ref[...],
                preferred_element_type=jnp.float32) + b3_ref[...]
    o_ref[...] = y.astype(o_ref.dtype)


def prepare_params(torch_params):
    """torch_params: ((W1,b1),(W2,b2),(W3,b3)), Wk in PyTorch [out, in] layout.

    Returns weights pre-transposed to [in, out] and cast to bf16, biases as
    (1, out) f32 — done once, outside the hot call (no per-call transpose)."""
    prepped = []
    for w, b in torch_params:
        prepped.append((jnp.asarray(w).T.astype(jnp.bfloat16),
                        jnp.asarray(b, jnp.float32).reshape(1, -1)))
    return tuple(prepped)


def im2text_forward(x, params, *, tm=256):
    """x: [..., E] f32; params: output of prepare_params(). Returns [..., O] f32."""
    (w1, b1), (w2, b2), (w3, b3) = params
    E, H1 = w1.shape
    H1b, H2 = w2.shape
    H2b, O = w3.shape
    assert H1 == H1b and H2 == H2b and x.shape[-1] == E

    lead = x.shape[:-1]
    x2 = x.reshape(-1, E)
    m = x2.shape[0]

    # Row tile: prefer 256 (v6e/v7x MXU height); never below the 8-sublane min.
    tm = max(8, min(tm, _round_up(m, 8)))
    mp = _round_up(m, tm)
    if mp != m:
        # Ragged M: pad rows up to a tile multiple (keeps big-tile pipeline);
        # padded rows are sliced off below.
        x2 = jnp.pad(x2, ((0, mp - m), (0, 0)))
    grid = (mp // tm,)

    # --- explicit VMEM budget (v7x has only 64 MiB per TensorCore) ------------
    wbytes = (w1.size + w2.size + w3.size) * 2          # resident bf16 weights
    bbytes = (b1.size + b2.size + b3.size) * 4          # resident f32 biases
    io_tile_bytes = tm * (E + O) * 4                    # one x tile + one out tile
    vmem_needed = (2 * (wbytes + bbytes + io_tile_bytes)   # 2x for double-buffering
                   + 4 * tm * max(H1, H2) * 4)             # f32 intermediates headroom
    vmem_limit = int(min(max(vmem_needed + (8 << 20), 32 << 20), 64 << 20))

    # --- cost estimate so XLA schedules neighbours correctly ------------------
    flops = 2 * mp * (E * H1 + H1 * H2 + H2 * O)
    bytes_accessed = mp * (E + O) * 4 + wbytes + bbytes
    cost = pl.CostEstimate(flops=int(flops), transcendentals=0,
                           bytes_accessed=int(bytes_accessed))

    out = pl.pallas_call(
        _im2text_kernel,
        out_shape=jax.ShapeDtypeStruct((mp, O), x.dtype),
        grid_spec=pltpu.PrefetchScalarGridSpec(
            num_scalar_prefetch=0,
            grid=grid,
            in_specs=[
                pl.BlockSpec((tm, E), lambda i: (i, 0)),    # x row tile
                pl.BlockSpec((E, H1), lambda i: (0, 0)),    # W1 (resident)
                pl.BlockSpec((1, H1), lambda i: (0, 0)),    # b1 (resident)
                pl.BlockSpec((H1, H2), lambda i: (0, 0)),   # W2 (resident)
                pl.BlockSpec((1, H2), lambda i: (0, 0)),    # b2 (resident)
                pl.BlockSpec((H2, O), lambda i: (0, 0)),    # W3 (resident)
                pl.BlockSpec((1, O), lambda i: (0, 0)),     # b3 (resident)
            ],
            out_specs=pl.BlockSpec((tm, O), lambda i: (i, 0)),
        ),
        compiler_params=pltpu.CompilerParams(
            dimension_semantics=("parallel",),
            vmem_limit_bytes=vmem_limit,
        ),
        cost_estimate=cost,
    )(x2, w1, b1, w2, b2, w3, b3)

    if mp != m:
        out = out[:m]
    return out.reshape(*lead, O)


if __name__ == "__main__":
    # Small but lane-dense config (multiples of 128; module default is 512).
    embed_dim = middle_dim = output_dim = 256
    M = 512                 # rows -> grid of 2 x 256-row tiles (feeds both v7x TCs)

    key = jax.random.PRNGKey(0)
    kx, k0, k1, k2, k3, k4, k5 = jax.random.split(key, 7)

    def linear_init(kw, kb, fan_in, fan_out):
        # PyTorch nn.Linear default init: U(-1/sqrt(fan_in), 1/sqrt(fan_in))
        bound = 1.0 / (fan_in ** 0.5)
        w = jax.random.uniform(kw, (fan_out, fan_in), jnp.float32, -bound, bound)
        b = jax.random.uniform(kb, (fan_out,), jnp.float32, -bound, bound)
        return w, b

    torch_params = (
        linear_init(k0, k1, embed_dim, middle_dim),    # layers[0].Linear
        linear_init(k2, k3, middle_dim, middle_dim),   # layers[1].Linear
        linear_init(k4, k5, middle_dim, output_dim),   # fc_out
    )

    x = jax.random.normal(kx, (M, embed_dim), jnp.float32)

    params = prepare_params(torch_params)        # transpose + bf16 cast, once
    out = im2text_forward(x, params, tm=256)
    out = jax.block_until_ready(out)

    # Reference: same math path (bf16 MXU matmul, f32 accumulation, eval-mode
    # dropout = identity) in plain JAX.
    def ref_forward(xx, tparams):
        h = xx
        for li, (w, b) in enumerate(tparams):
            h = jnp.dot(h.astype(jnp.bfloat16), w.T.astype(jnp.bfloat16),
                        preferred_element_type=jnp.float32) + b
            if li < len(tparams) - 1:
                h = jnp.maximum(h, 0.0)
        return h

    ref = ref_forward(x, torch_params)
    assert out.shape == (M, output_dim)
    # bf16 matmul path -> tolerance loosened vs a pure-f32 reference.
    assert jnp.allclose(out, ref, atol=2e-2, rtol=2e-2), "mismatch vs reference"

    print("KERNEL_OK")
</pallas_src>

<mosaic_0001>
module attributes {stable_mosaic.version = 11 : i64} {
  func.func @_im2text_kernel(%arg0: i32, %arg1: memref<256x256xf32, #tpu.memory_space<vmem>>, %arg2: memref<256x256xbf16, #tpu.memory_space<vmem>>, %arg3: memref<1x256xf32, #tpu.memory_space<vmem>>, %arg4: memref<256x256xbf16, #tpu.memory_space<vmem>>, %arg5: memref<1x256xf32, #tpu.memory_space<vmem>>, %arg6: memref<256x256xbf16, #tpu.memory_space<vmem>>, %arg7: memref<1x256xf32, #tpu.memory_space<vmem>>, %arg8: memref<256x256xf32, #tpu.memory_space<vmem>>) attributes {dimension_semantics = [#tpu.dimension_semantics<parallel>], iteration_bounds = array<i64: 2>, scalar_prefetch = 0 : i64, scratch_operands = 0 : i64, tpu.core_type = #tpu.core_type<tc>, window_params = [{transform_indices = @transform_0, window_bounds = array<i64: 256, 256>}, {pipeline_mode = #tpu.pipeline_mode<synchronous>, transform_indices = @transform_1, window_bounds = array<i64: 256, 256>}, {pipeline_mode = #tpu.pipeline_mode<synchronous>, transform_indices = @transform_2, window_bounds = array<i64: 1, 256>}, {pipeline_mode = #tpu.pipeline_mode<synchronous>, transform_indices = @transform_3, window_bounds = array<i64: 256, 256>}, {pipeline_mode = #tpu.pipeline_mode<synchronous>, transform_indices = @transform_4, window_bounds = array<i64: 1, 256>}, {pipeline_mode = #tpu.pipeline_mode<synchronous>, transform_indices = @transform_5, window_bounds = array<i64: 256, 256>}, {pipeline_mode = #tpu.pipeline_mode<synchronous>, transform_indices = @transform_6, window_bounds = array<i64: 1, 256>}, {transform_indices = @transform_7, window_bounds = array<i64: 256, 256>}]} {
    %c0 = arith.constant 0 : index
    %c0_0 = arith.constant 0 : index
    %0 = vector.load %arg1[%c0, %c0_0] : memref<256x256xf32, #tpu.memory_space<vmem>>, vector<256x256xf32>
    %1 = arith.truncf %0 : vector<256x256xf32> to vector<256x256xbf16>
    %c0_1 = arith.constant 0 : index
    %c0_2 = arith.constant 0 : index
    %2 = vector.load %arg2[%c0_1, %c0_2] : memref<256x256xbf16, #tpu.memory_space<vmem>>, vector<256x256xbf16>
    %cst = arith.constant dense<0.000000e+00> : vector<256x256xf32>
    %3 = tpu.matmul %1, %2, %cst {dimension_numbers = #tpu.dot_dimension_numbers<[1], [0], [0], [1], [0, 0, 1, 1], [], []>} : vector<256x256xbf16>, vector<256x256xbf16>, vector<256x256xf32> -> vector<256x256xf32>
    %c0_3 = arith.constant 0 : index
    %c0_4 = arith.constant 0 : index
    %4 = vector.load %arg3[%c0_3, %c0_4] : memref<1x256xf32, #tpu.memory_space<vmem>>, vector<1x256xf32>
    %5 = vector.broadcast %4 : vector<1x256xf32> to vector<256x256xf32>
    %6 = arith.addf %3, %5 : vector<256x256xf32>
    %cst_5 = arith.constant 0.000000e+00 : f32
    %7 = vector.broadcast %cst_5 : f32 to vector<256x256xf32>
    %8 = arith.maximumf %6, %7 : vector<256x256xf32>
    %9 = arith.truncf %8 : vector<256x256xf32> to vector<256x256xbf16>
    %c0_6 = arith.constant 0 : index
    %c0_7 = arith.constant 0 : index
    %10 = vector.load %arg4[%c0_6, %c0_7] : memref<256x256xbf16, #tpu.memory_space<vmem>>, vector<256x256xbf16>
    %cst_8 = arith.constant dense<0.000000e+00> : vector<256x256xf32>
    %11 = tpu.matmul %9, %10, %cst_8 {dimension_numbers = #tpu.dot_dimension_numbers<[1], [0], [0], [1], [0, 0, 1, 1], [], []>} : vector<256x256xbf16>, vector<256x256xbf16>, vector<256x256xf32> -> vector<256x256xf32>
    %c0_9 = arith.constant 0 : index
    %c0_10 = arith.constant 0 : index
    %12 = vector.load %arg5[%c0_9, %c0_10] : memref<1x256xf32, #tpu.memory_space<vmem>>, vector<1x256xf32>
    %13 = vector.broadcast %12 : vector<1x256xf32> to vector<256x256xf32>
    %14 = arith.addf %11, %13 : vector<256x256xf32>
    %cst_11 = arith.constant 0.000000e+00 : f32
    %15 = vector.broadcast %cst_11 : f32 to vector<256x256xf32>
    %16 = arith.maximumf %14, %15 : vector<256x256xf32>
    %17 = arith.truncf %16 : vector<256x256xf32> to vector<256x256xbf16>
    %c0_12 = arith.constant 0 : index
    %c0_13 = arith.constant 0 : index
    %18 = vector.load %arg6[%c0_12, %c0_13] : memref<256x256xbf16, #tpu.memory_space<vmem>>, vector<256x256xbf16>
    %cst_14 = arith.constant dense<0.000000e+00> : vector<256x256xf32>
    %19 = tpu.matmul %17, %18, %cst_14 {dimension_numbers = #tpu.dot_dimension_numbers<[1], [0], [0], [1], [0, 0, 1, 1], [], []>} : vector<256x256xbf16>, vector<256x256xbf16>, vector<256x256xf32> -> vector<256x256xf32>
    %c0_15 = arith.constant 0 : index
    %c0_16 = arith.constant 0 : index
    %20 = vector.load %arg7[%c0_15, %c0_16] : memref<1x256xf32, #tpu.memory_space<vmem>>, vector<1x256xf32>
    %21 = vector.broadcast %20 : vector<1x256xf32> to vector<256x256xf32>
    %22 = arith.addf %19, %21 : vector<256x256xf32>
    %c0_17 = arith.constant 0 : index
    %c0_18 = arith.constant 0 : index
    %23 = vector.load %arg8[%c0_17, %c0_18] : memref<256x256xf32, #tpu.memory_space<vmem>>, vector<256x256xf32>
    tpu.vector_store %arg8[%c0_17, %c0_18], %22 {strides = array<i32>} : memref<256x256xf32, #tpu.memory_space<vmem>>, vector<256x256xf32>,
    return
  }
  func.func @transform_0(%arg0: i32) -> (i32, i32) {
    %c0_i32 = arith.constant 0 : i32
    %c0_i32_0 = arith.constant 0 : i32
    return %arg0, %c0_i32 : i32, i32
  }
  func.func @transform_1(%arg0: i32) -> (i32, i32) {
    %c0_i32 = arith.constant 0 : i32
    %c0_i32_0 = arith.constant 0 : i32
    %c0_i32_1 = arith.constant 0 : i32
    return %c0_i32, %c0_i32_0 : i32, i32
  }
  func.func @transform_2(%arg0: i32) -> (i32, i32) {
    %c0_i32 = arith.constant 0 : i32
    %c0_i32_0 = arith.constant 0 : i32
    %c0_i32_1 = arith.constant 0 : i32
    return %c0_i32, %c0_i32_0 : i32, i32
  }
  func.func @transform_3(%arg0: i32) -> (i32, i32) {
    %c0_i32 = arith.constant 0 : i32
    %c0_i32_0 = arith.constant 0 : i32
    %c0_i32_1 = arith.constant 0 : i32
    return %c0_i32, %c0_i32_0 : i32, i32
  }
  func.func @transform_4(%arg0: i32) -> (i32, i32) {
    %c0_i32 = arith.constant 0 : i32
    %c0_i32_0 = arith.constant 0 : i32
    %c0_i32_1 = arith.constant 0 : i32
    return %c0_i32, %c0_i32_0 : i32, i32
  }
  func.func @transform_5(%arg0: i32) -> (i32, i32) {
    %c0_i32 = arith.constant 0 : i32
    %c0_i32_0 = arith.constant 0 : i32
    %c0_i32_1 = arith.constant 0 : i32
    return %c0_i32, %c0_i32_0 : i32, i32
  }
  func.func @transform_6(%arg0: i32) -> (i32, i32) {
    %c0_i32 = arith.constant 0 : i32
    %c0_i32_0 = arith.constant 0 : i32
    %c0_i32_1 = arith.constant 0 : i32
    return %c0_i32, %c0_i32_0 : i32, i32
  }
  func.func @transform_7(%arg0: i32) -> (i32, i32) {
    %c0_i32 = arith.constant 0 : i32
    %c0_i32_0 = arith.constant 0 : i32
    return %arg0, %c0_i32 : i32, i32
  }
}

</mosaic_0001>

<bundles_post_ra>
// kernel: tpu_custom_call.1
= control target key start
LH: loop header
LB: loop body
LE: loop exit
PB: predicated region body
PF: predicated region fallthrough
CT: control target
= control target key end

     0   :  { %s4151_s0 = inlined_call_operand.hbm [shape: f32[512,256], index: 0, kind: input, shape index: {}]   ;;  %s4152_s1 = inlined_call_operand.hbm [shape: bf16[256,256], index: 1, kind: input, shape index: {}]   ;;  %s4153_s2 = inlined_call_operand.hbm [shape: f32[1,256], index: 2, kind: input, shape index: {}]   ;;  %s4154_s3 = inlined_call_operand.hbm [shape: bf16[256,256], index: 3, kind: input, shape index: {}]   ;;  %s4155_s4 = inlined_call_operand.vmem [shape: f32[1,256], index: 4, kind: input, shape index: {}]   ;;  %s4156_s5 = inlined_call_operand.hbm [shape: bf16[256,256], index: 5, kind: input, shape index: {}]   ;;  %s4157_s6 = inlined_call_operand.vmem [shape: f32[1,256], index: 6, kind: input, shape index: {}]   ;;  %s4158_s7 = inlined_call_operand.hbm [shape: f32[512,256], index: 7, kind: output, shape index: {}]  }
   0x1   :  { %4159 = sst [smem:[#allocation16_spill]] %s4152_s1 }
   0x2   :  { %12 = vsyncpa [#allocation3], 0 }
   0x3   :  { %14 = vsyncpa [#allocation3 + $0x1], 0 }
   0x4   :  { %15 = vsyncpa [#allocation6], 0 }
   0x5   :  { %16 = vsyncpa [#allocation9], 0 }
   0x6   :  { %17 = vsyncpa [#allocation4], 0 }
   0x7   :  { %19 = vsyncpa [#allocation4 + $0x1], 0  ;;  %s3385_s24 = smov 0   ;;  %s3387_s25 = smov 0  }
   0x8   :  { %s3389_s26 = smov 0   ;;  %s3391_s27 = smov 0  }
   0x9 LB: > { %s3406_s28 = sadd.s32 4294967295, %s3333_s27   ;;  %s2508_s29 = sadd.s32 4294967294, %s3333_s27   ;;  %s3333_s27 = sphi %s3391_s27, %s4171_s27   ;;  %s3329_s26 = sphi %s3389_s26, %s4170_s26   ;;  %s3325_s25 = sphi %s3387_s25, %s4169_s25   ;;  %s3321_s24 = sphi %s3385_s24, %s4168_s24  }
   0xa   : > { %p45_p0 = scmp.ne.s32.totalorder %s3325_s25, %s3321_s24  ;;  %p46_p1 = scmp.eq.s32.totalorder %s3406_s28, 0 }
   0xb   : > { %p195_p2 = scmp.eq.s32.totalorder %s3406_s28, 1  ;;  %p201_p3 = scmp.eq.s32.totalorder %s2508_s29, 1 }
   0xc   : > { %p3415_p4 = por %p46_p1, %p45_p0  ;;  %p2509_p5 = scmp.ge.s32.totalorder %s3333_s27, 1 }
   0xd   : > { %p3420_p6 = por %p201_p3, %p45_p0  ;;  %p208_p7 = scmp.lt.s32.totalorder %s3333_s27, 3 }
   0xe   : > { %s4162_s1 = sld [smem:[#allocation16_spill]]  ;;  %s3335_s13 = smov [#allocation5]  }
   0xf   : > { %p3428_p8 = pnand %p2509_p5, %p208_p7  ;;  %s221_s14 = sshll.u32 %s3335_s13, 4  ;;  %s222_s14 = int_to_ptr.vmem [resolvable:$true] %s221_s14 }
  0x10   : > { %s245_s18 = sshll.u32 %s4154_s3, 4  ;;  %s3336_s19 = smov 128   ;;  %s246_s18 = int_to_ptr.hbm [resolvable:$true] %s245_s18 }
  0x11   : > { %p3036_p9 = pneg %p3428_p8  ;;  %s3337_s20 = smov 8  }
  0x12   : > { %s3338_s21 = smov [#allocation8]   ;;  %s234_s9 = sshll.u32 %s4153_s2, 4  ;;  %s235_s9 = int_to_ptr.hbm [resolvable:$true] %s234_s9 }
  0x13   : > { %p3436_p10 = pnand %p3036_p9, %p46_p1  ;;  %s247_s22 = sshll.u32 %s3338_s21, 4  ;;  %s248_s22 = int_to_ptr.vmem [resolvable:$true] %s247_s22 }
  0x14   : > { %s219_s11 = sshll.u32 %s4162_s1, 4  ;;  %s3340_s17 = smov [#allocation10]   ;;  %s220_s11 = int_to_ptr.hbm [resolvable:$true] %s219_s11 }
  0x15   : > { %3039 = dma.hbm_to_vmem [thread:$0]  (!%p3436_p10), %s220_s11, 4096, %s222_s14, [#allocation6], %s3336_s19, %s3336_s19, %s3337_s20  }
  0x16   : > { %3045 = dma.hbm_to_vmem [thread:$0]  (!%p3436_p10), %s246_s18, 4096, %s248_s22, [#allocation9], %s3336_s19, %s3336_s19, %s3337_s20  }
  0x17   : > { %s262_s11 = sshll.u32 %s4156_s5, 4  ;;  %s3339_s14 = smov [#allocation7]   ;;  %s263_s11 = int_to_ptr.hbm [resolvable:$true] %s262_s11 }
  0x18   : > { %s236_s16 = sshll.u32 %s3339_s14, 4  ;;  %s264_s21 = sshll.u32 %s3340_s17, 4  ;;  %s237_s16 = int_to_ptr.vmem [resolvable:$true] %s236_s16  ;;  %s265_s21 = int_to_ptr.vmem [resolvable:$true] %s264_s21 }
  0x19   : > { %3042 = dma.hbm_to_vmem [thread:$0]  (!%p3436_p10), %s235_s9, 32, %s237_s16, [#allocation6]  }
  0x1a   : > { %3048 = dma.hbm_to_vmem [thread:$0]  (!%p3436_p10), %s263_s11, 4096, %s265_s21, [#allocation9], %s3336_s19, %s3336_s19, %s3337_s20  }
  0x1b   : > { %s3459_s18 = sadd.s32 1, %s3333_s27   ;;  %s32_s22 = sadd.s32 1, %s3329_s26 }
  0x1c   : > { %s29_s23 = ssub.s32 %s3333_s27, %s3459_s18  ;;  %p39_p12 = scmp.ne.s32.totalorder %s3329_s26, %s3325_s25 }
  0x1d   : > { %p30_p13 = scmp.eq.s32.totalorder %s29_s23, 0  ;;  %p40_p0 = scmp.eq.s32.totalorder %s3333_s27, 0 }
  0x1e   : > { %p3469_p3 = por %p195_p2, %p39_p12  ;;  %p3061_p5 = scmp.lt.s32.totalorder %s3333_s27, 2 }
  0x1f   : > { %s3475_s9 = scalar_select %p30_p13, %s3329_s26, %s32_s22  }
  0x20   : > { %p41_p7 = por %p40_p0, %p39_p12  ;;  %s281_s10 = sand.u32 1, %s3329_s26  }
  0x21   : > { %s2515_s15 = sshll.u32 %s281_s10, 9  ;;  %s2917_s19 = sshll.u32 %s3333_s27, 9 }
  0x22   : > { %s291_s11 = scalar_lea.hbm %s4151_s0, %s2917_s19  ;;  %s285_s14 = scalar_lea.vmem [#allocation2], %s2515_s15 }
  0x23   : > { %s294_s16 = sshll.u32 %s285_s14, 4  ;;  %s292_s17 = sshll.u32 %s291_s11, 4  ;;  %s295_s16 = int_to_ptr.vmem [resolvable:$true] %s294_s16  ;;  %s293_s17 = int_to_ptr.hbm [resolvable:$true] %s292_s17 }
  0x24   : > { %p3482_p2 = pnand %p3061_p5, %p41_p7  ;;  %s282_s22 = scalar_lea.sflag [#allocation3], %s281_s10 }
  0x25   : > { %s3229_s23 = sshra.s32 %s293_s17, 4  ;;  %s3236_s20 = scalar_lea.hbm %s4151_s0, 1024  ;;  %s3230_s23 = int_to_ptr.hbm [resolvable:$true] %s3229_s23 }
  0x26   : > { %s3231_s1 = scalar_lea.hbm %s3230_s23, 512  ;;  %p3233_p10 = pneg %p3482_p2 }
  0x27   : > { %p3232_p9 = scmp.ne.s32.totalorder %s3230_s23, %s3231_s1  ;;  %p3237_p0 = scmp.lt.s32.totalorder %s3230_s23, %s4151_s0 }
  0x28   : > { %p3238_p5 = scmp.lt.s32.totalorder %s3236_s20, %s3231_s1 }
  0x29   : > { %p3234_p12 = pnand %p3233_p10, %p3232_p9 }
  0x2a   : > { %p3239_p7 = por %p3238_p5, %p3237_p0 }
  0x2b   : > { %p3235_p13 = pneg %p3234_p12 }
  0x2d   : > { %p3240_p11 = pnand %p3239_p7, %p3235_p13 }
  0x2f   : > { %3243 = shalt.err (!%p3240_p11)
}
  0x30   : > { %s3341_s10 = smov 256   ;;  %s3342_s14 = smov 16  }
  0x31   : > { %3052 = dma.hbm_to_vmem [thread:$0]  (!%p3482_p2), %s293_s17, 8192, %s295_s16, %s282_s22, %s3341_s10, %s3341_s10, %s3342_s14  }
  0x32   : > { %306 = sbr.rel (%p3428_p8) target bundleno = 996 (0x3e4), region = 48  ;;  %s3499_s19 = sand.u32 (!%p3428_p8), 1, %s3325_s25  }
  0x33   : > { %s2520_s23 = sshll.u32 (!%p3428_p8), %s3499_s19, 9  ;;  %s309_s1 = scalar_lea.sflag (!%p3428_p8), [#allocation3], %s3499_s19 }
  0x34   : > { %s3505_s15 = scalar_lea.vmem (!%p3428_p8), [#allocation2], %s2520_s23 }
  0x37   : > { %3304 = dma.done.wait (%p3415_p4), %s309_s1, 8192  }
  0x38   : > { %3306 = vsyncadd (%p3415_p4), %s309_s1, 4294959104 }
  0x39   : > { %3308 = dma.done.wait (%p46_p1), [#allocation6], 4128  }
  0x3a   : > { %3310 = vsyncadd (%p46_p1), [#allocation6], 4294963168 }
  0x3b   : > { %3312 = dma.done.wait (%p46_p1), [#allocation9], 8192  }
  0x3c   : > { %3314 = vsyncadd (%p46_p1), [#allocation9], 4294959104  ;;  %v2584_v0 = vld [vmem:[#allocation5 + $0x70] sm:$0xf]  ;;  %v2933_v1 = vld [vmem:[#allocation5 + $0x74] sm:$0xf0] }
  0x3d   : > { %v2648_v2 = vld [vmem:[#allocation5 + $0xf0] sm:$0xf]  ;;  %v2585_v3 = vor.u32 %v2933_v1, %v2584_v0  ;;  %v2949_v4 = vld [vmem:[#allocation5 + $0xf4] sm:$0xf0]  ;;  %v2932_v5 = vld [vmem:[#allocation5 + $0x74] sm:$0xf] }
  0x3e   : > { %v2586_v6 = vld [vmem:[#allocation5 + $0x78] sm:$0xf0]  ;;  %v2649_v7 = vor.u32 %v2949_v4, %v2648_v2  ;;  %v2948_v9 = vld [vmem:[#allocation5 + $0xf4] sm:$0xf]  ;;  %v2576_v11 = vld [vmem:[#allocation5 + $0x60] sm:$0xf] }
  0x3f   : > { %v2589_v8 = vor.u32 %v2932_v5, %v2586_v6  ;;  %v2650_v10 = vld [vmem:[#allocation5 + $0xf8] sm:$0xf0]  ;;  %660 = vmatpush.bf16.msra.mxu0 %v2585_v3  ;;  %v2931_v13 = vld [vmem:[#allocation5 + $0x64] sm:$0xf0]  ;;  %v2640_v14 = vld [vmem:[#allocation5 + $0xe0] sm:$0xf] }
  0x40   : > { %v2653_v12 = vor.u32 %v2948_v9, %v2650_v10  ;;  %v2947_v15 = vld [vmem:[#allocation5 + $0xe4] sm:$0xf0]  ;;  %749 = vmatpush.bf16.msra.mxu1 %v2649_v7  ;;  %v2577_v16 = vor.u32 %v2931_v13, %v2576_v11  ;;  %v2930_v18 = vld [vmem:[#allocation5 + $0x64] sm:$0xf]  ;;  %v2578_v19 = vld [vmem:[#allocation5 + $0x68] sm:$0xf0] }
  0x41   : > { %838 = vmatpush.bf16.msra.mxu2 %v2589_v8  ;;  %v2641_v17 = vor.u32 %v2947_v15, %v2640_v14  ;;  %v2946_v20 = vld [vmem:[#allocation5 + $0xe4] sm:$0xf]  ;;  %v2581_v21 = vor.u32 %v2930_v18, %v2578_v19  ;;  %v2642_v22 = vld [vmem:[#allocation5 + $0xe8] sm:$0xf0]  ;;  %v2568_v23 = vld [vmem:[#allocation5 + $0x50] sm:$0xf] }
  0x42   : > { %927 = vmatpush.bf16.msra.mxu3 %v2653_v12  ;;  %v2929_v24 = vld [vmem:[#allocation5 + $0x54] sm:$0xf0]  ;;  %v2645_v25 = vor.u32 %v2946_v20, %v2642_v22  ;;  %v2632_v26 = vld [vmem:[#allocation5 + $0xd0] sm:$0xf]  ;;  %v2928_v28 = vld [vmem:[#allocation5 + $0x54] sm:$0xf] }
  0x43   : > { %v2945_v27 = vld [vmem:[#allocation5 + $0xd4] sm:$0xf0]  ;;  %661 = vmatpush.bf16.msra.mxu0 %v2577_v16  ;;  %v2569_v29 = vor.u32 %v2929_v24, %v2568_v23  ;;  %v2570_v30 = vld [vmem:[#allocation5 + $0x58] sm:$0xf0]  ;;  %v2944_v31 = vld [vmem:[#allocation5 + $0xd4] sm:$0xf] }
  0x44   : > { %v2634_v32 = vld [vmem:[#allocation5 + $0xd8] sm:$0xf0]  ;;  %750 = vmatpush.bf16.msra.mxu1 %v2641_v17  ;;  %v2633_v33 = vor.u32 %v2945_v27, %v2632_v26  ;;  %v2573_v34 = vor.u32 %v2928_v28, %v2570_v30  ;;  %v2560_v35 = vld [vmem:[#allocation5 + $0x40] sm:$0xf]  ;;  %v2927_v36 = vld [vmem:[#allocation5 + $0x44] sm:$0xf0] }
  0x45   : > { %839 = vmatpush.bf16.msra.mxu2 %v2581_v21  ;;  %v2624_v37 = vld [vmem:[#allocation5 + $0xc0] sm:$0xf]  ;;  %v2637_v38 = vor.u32 %v2944_v31, %v2634_v32  ;;  %v2943_v39 = vld [vmem:[#allocation5 + $0xc4] sm:$0xf0]  ;;  %v2926_v40 = vld [vmem:[#allocation5 + $0x44] sm:$0xf]  ;;  %v2561_v44 = vor.u32 %v2927_v36, %v2560_v35 }
  0x46   : > { %928 = vmatpush.bf16.msra.mxu3 %v2645_v25  ;;  %v2562_v41 = vld [vmem:[#allocation5 + $0x48] sm:$0xf0]  ;;  %v2942_v42 = vld [vmem:[#allocation5 + $0xc4] sm:$0xf]  ;;  %v2625_v45 = vor.u32 %v2943_v39, %v2624_v37  ;;  %v2552_v47 = vld [vmem:[#allocation5 + $0x30] sm:$0xf] }
  0x47   : > { %v2626_v43 = vld [vmem:[#allocation5 + $0xc8] sm:$0xf0]  ;;  %662 = vmatpush.bf16.msra.mxu0 %v2569_v29  ;;  %v2565_v46 = vor.u32 %v2926_v40, %v2562_v41  ;;  %v2925_v48 = vld [vmem:[#allocation5 + $0x34] sm:$0xf0]  ;;  %v2616_v49 = vld [vmem:[#allocation5 + $0xb0] sm:$0xf] }
  0x48   : > { %751 = vmatpush.bf16.msra.mxu1 %v2633_v33  ;;  %v2629_v50 = vor.u32 %v2942_v42, %v2626_v43  ;;  %v2941_v51 = vld [vmem:[#allocation5 + $0xb4] sm:$0xf0]  ;;  %v2924_v52 = vld [vmem:[#allocation5 + $0x34] sm:$0xf]  ;;  %v2554_v53 = vld [vmem:[#allocation5 + $0x38] sm:$0xf0]  ;;  %v2553_v56 = vor.u32 %v2925_v48, %v2552_v47 }
  0x49   : > { %840 = vmatpush.bf16.msra.mxu2 %v2573_v34  ;;  %v2940_v54 = vld [vmem:[#allocation5 + $0xb4] sm:$0xf]  ;;  %v2618_v55 = vld [vmem:[#allocation5 + $0xb8] sm:$0xf0]  ;;  %v2617_v57 = vor.u32 %v2941_v51, %v2616_v49  ;;  %v2557_v58 = vor.u32 %v2924_v52, %v2554_v53  ;;  %v2544_v59 = vld [vmem:[#allocation5 + $0x20] sm:$0xf] }
  0x4a   : > { %929 = vmatpush.bf16.msra.mxu3 %v2637_v38  ;;  %v2923_v60 = vld [vmem:[#allocation5 + $0x24] sm:$0xf0]  ;;  %v2608_v61 = vld [vmem:[#allocation5 + $0xa0] sm:$0xf]  ;;  %v2621_v62 = vor.u32 %v2940_v54, %v2618_v55  ;;  %v2922_v0 = vld [vmem:[#allocation5 + $0x24] sm:$0xf] }
  0x4b   : > { %663 = vmatpush.bf16.msra.mxu0 %v2561_v44  ;;  %v2939_v63 = vld [vmem:[#allocation5 + $0xa4] sm:$0xf0]  ;;  %v2546_v1 = vld [vmem:[#allocation5 + $0x28] sm:$0xf0]  ;;  %v2938_v2 = vld [vmem:[#allocation5 + $0xa4] sm:$0xf]  ;;  %v2545_v4 = vor.u32 %v2923_v60, %v2544_v59 }
  0x4c   : > { %752 = vmatpush.bf16.msra.mxu1 %v2625_v45  ;;  %v2610_v3 = vld [vmem:[#allocation5 + $0xa8] sm:$0xf0]  ;;  %v2609_v5 = vor.u32 %v2939_v63, %v2608_v61  ;;  %v2549_v6 = vor.u32 %v2922_v0, %v2546_v1  ;;  %v2536_v7 = vld [vmem:[#allocation5 + $0x10] sm:$0xf]  ;;  %v2921_v8 = vld [vmem:[#allocation5 + $0x14] sm:$0xf0] }
  0x4d   : > { %841 = vmatpush.bf16.msra.mxu2 %v2565_v46  ;;  %v2600_v9 = vld [vmem:[#allocation5 + $0x90] sm:$0xf]  ;;  %v2613_v10 = vor.u32 %v2938_v2, %v2610_v3  ;;  %v2937_v11 = vld [vmem:[#allocation5 + $0x94] sm:$0xf0]  ;;  %v2920_v12 = vld [vmem:[#allocation5 + $0x14] sm:$0xf]  ;;  %v2537_v16 = vor.u32 %v2921_v8, %v2536_v7 }
  0x4e   : > { %930 = vmatpush.bf16.msra.mxu3 %v2629_v50  ;;  %v2538_v13 = vld [vmem:[#allocation5 + $0x18] sm:$0xf0]  ;;  %v2936_v14 = vld [vmem:[#allocation5 + $0x94] sm:$0xf]  ;;  %v2528_v17 = vld [vmem:[#allocation5] sm:$0xf]  ;;  %v2601_v19 = vor.u32 %v2937_v11, %v2600_v9 }
  0x4f   : > { %664 = vmatpush.bf16.msra.mxu0 %v2553_v56  ;;  %v2602_v15 = vld [vmem:[#allocation5 + $0x98] sm:$0xf0]  ;;  %v2919_v18 = vld [vmem:[#allocation5 + $0x4] sm:$0xf0]  ;;  %v2541_v20 = vor.u32 %v2920_v12, %v2538_v13  ;;  %v2592_v21 = vld [vmem:[#allocation5 + $0x80] sm:$0xf] }
  0x50   : > { %753 = vmatpush.bf16.msra.mxu1 %v2617_v57  ;;  %v2935_v22 = vld [vmem:[#allocation5 + $0x84] sm:$0xf0]  ;;  %v2918_v23 = vld [vmem:[#allocation5 + $0x4] sm:$0xf]  ;;  %v2605_v24 = vor.u32 %v2936_v14, %v2602_v15  ;;  %v2530_v25 = vld [vmem:[#allocation5 + $0x8] sm:$0xf0]  ;;  %v2529_v31 = vor.u32 %v2919_v18, %v2528_v17 }
  0x51   : > { %842 = vmatpush.bf16.msra.mxu2 %v2557_v58  ;;  %v2934_v26 = vld [vmem:[#allocation5 + $0x84] sm:$0xf]  ;;  %v2594_v27 = vld [vmem:[#allocation5 + $0x88] sm:$0xf0]  ;;  %v2964_v29 = vld [vmem:[#allocation8 + $0x74] sm:$0xf]  ;;  %v2593_v35 = vor.u32 %v2935_v22, %v2592_v21  ;;  %v2533_v36 = vor.u32 %v2918_v23, %v2530_v25 }
  0x52   : > { %931 = vmatpush.bf16.msra.mxu3 %v2621_v62  ;;  %v366_v28 = vld [vmem:[%s3505_s15] sm:$0xff]  ;;  %v368_v32 = vld [vmem:[%s3505_s15 + $0x10] sm:$0xff]  ;;  %v367_v37 = vld [vmem:[%s3505_s15 + $0x8] sm:$0xff]  ;;  %v2597_v39 = vor.u32 %v2934_v26, %v2594_v27  ;;  %s3957_s21 = scalar_lea.vmem [#allocation11], %s2520_s23  ;;  %s3015_s22 = sshll.u32 %s3406_s28, 9 }
  0x53   : > { %665 = vmatpush.bf16.msra.mxu0 %v2545_v4  ;;  %v2714_v30 = vld [vmem:[#allocation8 + $0x78] sm:$0xf0]  ;;  %v2980_v33 = vld [vmem:[#allocation8 + $0xf4] sm:$0xf]  ;;  %v2712_v41 = vld [vmem:[#allocation8 + $0x70] sm:$0xf]  ;;  %v430_v43 = vpack.c.bf16 %v368_v32, %v366_v28  ;;  %s2393_s11 = scalar_lea.hbm %s4158_s7, %s3015_s22 }
  0x54   : > { %754 = vmatpush.bf16.msra.mxu1 %v2609_v5  ;;  %v2778_v34 = vld [vmem:[#allocation8 + $0xf8] sm:$0xf0]  ;;  %v2717_v40 = vor.u32 %v2964_v29, %v2714_v30  ;;  %v2965_v42 = vld [vmem:[#allocation8 + $0x74] sm:$0xf0]  ;;  %v2776_v45 = vld [vmem:[#allocation8 + $0xf0] sm:$0xf] }
  0x55   : > { %843 = vmatpush.bf16.msra.mxu2 %v2549_v6  ;;  %v369_v38 = vld [vmem:[%s3505_s15 + $0x18] sm:$0xff]  ;;  %v2781_v44 = vor.u32 %v2980_v33, %v2778_v34  ;;  %v2713_v48 = vor.u32 %v2965_v42, %v2712_v41  ;;  %v2962_v50 = vld [vmem:[#allocation8 + $0x64] sm:$0xf]  ;;  %v2706_v51 = vld [vmem:[#allocation8 + $0x68] sm:$0xf0]  ;;  %s2394_s10 = sshll.u32 %s3957_s21, 4  ;;  %s2395_s10 = int_to_ptr.vmem [resolvable:$true] %s2394_s10 }
  0x56   : > { %932 = vmatpush.bf16.msra.mxu3 %v2613_v10  ;;  %v2981_v46 = vld [vmem:[#allocation8 + $0xf4] sm:$0xf0]  ;;  %v431_v47 = vpack.c.bf16 %v369_v38, %v367_v37  ;;  %v2978_v52 = vld [vmem:[#allocation8 + $0xe4] sm:$0xf]  ;;  %v2709_v53 = vor.u32 %v2962_v50, %v2706_v51  ;;  %v2770_v54 = vld [vmem:[#allocation8 + $0xe8] sm:$0xf0] }
  0x57   : > { %666 = vmatpush.bf16.msra.mxu0 %v2537_v16  ;;  %v2777_v49 = vor.u32 %v2981_v46, %v2776_v45  ;;  %v2704_v55 = vld [vmem:[#allocation8 + $0x60] sm:$0xf]  ;;  %v2963_v56 = vld [vmem:[#allocation8 + $0x64] sm:$0xf0]  ;;  %v2773_v57 = vor.u32 %v2978_v52, %v2770_v54  ;;  %v372_v63 = vld [vmem:[%s3505_s15 + $0x30] sm:$0xff]  ;;  %s2396_s14 = sshll.u32 %s2393_s11, 4  ;;  %s2397_s14 = int_to_ptr.hbm [resolvable:$true] %s2396_s14 }
  0x58   : > { %755 = vmatpush.bf16.msra.mxu1 %v2601_v19  ;;  %v2705_v58 = vor.u32 %v2963_v56, %v2704_v55  ;;  %v2768_v59 = vld [vmem:[#allocation8 + $0xe0] sm:$0xf]  ;;  %v2979_v60 = vld [vmem:[#allocation8 + $0xe4] sm:$0xf0]  ;;  %v373_v1 = vld [vmem:[%s3505_s15 + $0x38] sm:$0xff]  ;;  %s2381_s28 = scalar_lea.sflag [#allocation4], %s3499_s19 }
  0x59   : > { %844 = vmatpush.bf16.msra.mxu2 %v2541_v20  ;;  %v2769_v61 = vor.u32 %v2979_v60, %v2768_v59  ;;  %v370_v62 = vld [vmem:[%s3505_s15 + $0x20] sm:$0xff]  ;;  %v371_v0 = vld [vmem:[%s3505_s15 + $0x28] sm:$0xff]  ;;  %v376_v5 = vld [vmem:[%s3505_s15 + $0x50] sm:$0xff]  ;;  %s3273_s23 = sshra.s32 %s2397_s14, 4  ;;  %s3279_s12 = scalar_lea.hbm %s4158_s7, 1024  ;;  %s3274_s23 = int_to_ptr.hbm [resolvable:$true] %s3273_s23 }
  0x5a   : > { %933 = vmatpush.bf16.msra.mxu3 %v2605_v24  ;;  %v432_v2 = vpack.c.bf16 %v372_v63, %v370_v62  ;;  %v433_v3 = vpack.c.bf16 %v373_v1, %v371_v0  ;;  %v374_v4 = vld [vmem:[%s3505_s15 + $0x40] sm:$0xff]  ;;  %v375_v6 = vld [vmem:[%s3505_s15 + $0x48] sm:$0xff]  ;;  %v377_v7 = vld [vmem:[%s3505_s15 + $0x58] sm:$0xff]  ;;  %s3275_s1 = scalar_lea.hbm %s3274_s23, 512  ;;  %p3280_p11 = scmp.lt.s32.totalorder %s3274_s23, %s4158_s7 }
  0x5b   : > { %667 = vmatpush.bf16.msra.mxu0 %v2529_v31  ;;  %v434_v8 = vpack.c.bf16 %v376_v5, %v374_v4  ;;  %v435_v9 = vpack.c.bf16 %v377_v7, %v375_v6  ;;  %v2960_v10 = vld [vmem:[#allocation8 + $0x54] sm:$0xf]  ;;  %v2698_v11 = vld [vmem:[#allocation8 + $0x58] sm:$0xf0]  ;;  %v2696_v15 = vld [vmem:[#allocation8 + $0x50] sm:$0xf]  ;;  %p3276_p1 = scmp.ne.s32.totalorder %s3274_s23, %s3275_s1  ;;  %p3281_p2 = scmp.lt.s32.totalorder %s3279_s12, %s3275_s1 }
  0x5c   : > { %756 = vmatpush.bf16.msra.mxu1 %v2593_v35  ;;  %v2976_v12 = vld [vmem:[#allocation8 + $0xd4] sm:$0xf]  ;;  %v2701_v13 = vor.u32 %v2960_v10, %v2698_v11  ;;  %v2762_v14 = vld [vmem:[#allocation8 + $0xd8] sm:$0xf0]  ;;  %v2961_v16 = vld [vmem:[#allocation8 + $0x54] sm:$0xf0] }
  0x5d   : > { %845 = vmatpush.bf16.msra.mxu2 %v2533_v36  ;;  %v2765_v17 = vor.u32 %v2976_v12, %v2762_v14  ;;  %v2697_v18 = vor.u32 %v2961_v16, %v2696_v15  ;;  %v2760_v19 = vld [vmem:[#allocation8 + $0xd0] sm:$0xf]  ;;  %v2977_v20 = vld [vmem:[#allocation8 + $0xd4] sm:$0xf0]  ;;  %v378_v22 = vld [vmem:[%s3505_s15 + $0x60] sm:$0xff]  ;;  %p3277_p4 = pnand %p3276_p1, %p3469_p3  ;;  %p3282_p9 = por %p3281_p2, %p3280_p11 }
  0x5e   : > { %934 = vmatpush.bf16.msra.mxu3 %v2597_v39  ;;  %668 = vmatmul.bf16.vlgmr.msra.gmra.mxu0 %v430_v43  ;;  %v2761_v21 = vor.u32 %v2977_v20, %v2760_v19  ;;  %v380_v23 = vld [vmem:[%s3505_s15 + $0x70] sm:$0xff]  ;;  %v379_v24 = vld [vmem:[%s3505_s15 + $0x68] sm:$0xff]  ;;  %v381_v25 = vld [vmem:[%s3505_s15 + $0x78] sm:$0xff] }
  0x5f   : > { %757 = vmatmul.bf16.vlgmr.msra.gmra.mxu1 %v431_v47  ;;  %1310 = vmatpush.bf16.msrb.mxu0 %v2713_v48  ;;  %v436_v26 = vpack.c.bf16 %v380_v23, %v378_v22  ;;  %v437_v27 = vpack.c.bf16 %v381_v25, %v379_v24  ;;  %v382_v28 = vld [vmem:[%s3505_s15 + $0x80] sm:$0xff]  ;;  %v384_v29 = vld [vmem:[%s3505_s15 + $0x90] sm:$0xff]  ;;  %v383_v30 = vld [vmem:[%s3505_s15 + $0x88] sm:$0xff]  ;;  %p3278_p8 = pneg %p3277_p4 }
  0x60   : > { %846 = vmatmul.bf16.vlgmr.msra.gmra.mxu2 %v430_v43  ;;  %1399 = vmatpush.bf16.msrb.mxu1 %v2777_v49  ;;  %v385_v31 = vld [vmem:[%s3505_s15 + $0x98] sm:$0xff]  ;;  %v438_v32 = vpack.c.bf16 %v384_v29, %v382_v28  ;;  %v2958_v34 = vld [vmem:[#allocation8 + $0x44] sm:$0xf]  ;;  %v2690_v35 = vld [vmem:[#allocation8 + $0x48] sm:$0xf0] }
  0x61   : > { %1488 = vmatpush.bf16.msrb.mxu2 %v2717_v40  ;;  %935 = vmatmul.bf16.vlgmr.msra.gmra.mxu3 %v431_v47  ;;  %v439_v33 = vpack.c.bf16 %v385_v31, %v383_v30  ;;  %v2974_v36 = vld [vmem:[#allocation8 + $0xc4] sm:$0xf]  ;;  %v2693_v37 = vor.u32 %v2958_v34, %v2690_v35  ;;  %v2754_v38 = vld [vmem:[#allocation8 + $0xc8] sm:$0xf0]  ;;  %v2688_v39 = vld [vmem:[#allocation8 + $0x40] sm:$0xf]  ;;  %p3283_p10 = pnand %p3282_p9, %p3278_p8 }
  0x62   : > { %1577 = vmatpush.bf16.msrb.mxu3 %v2781_v44  ;;  %v2959_v40 = vld [vmem:[#allocation8 + $0x44] sm:$0xf0]  ;;  %v2757_v41 = vor.u32 %v2974_v36, %v2754_v38  ;;  %v2752_v43 = vld [vmem:[#allocation8 + $0xc0] sm:$0xf]  ;;  %v388_v47 = vld [vmem:[%s3505_s15 + $0xb0] sm:$0xff] }
  0x63   : > { %1311 = vmatpush.bf16.msrb.mxu0 %v2705_v58  ;;  %v2689_v42 = vor.u32 %v2959_v40, %v2688_v39  ;;  %v2975_v44 = vld [vmem:[#allocation8 + $0xc4] sm:$0xf0]  ;;  %v386_v46 = vld [vmem:[%s3505_s15 + $0xa0] sm:$0xff]  ;;  %v389_v49 = vld [vmem:[%s3505_s15 + $0xb8] sm:$0xff] }
  0x64   : > { %1400 = vmatpush.bf16.msrb.mxu1 %v2769_v61  ;;  %v2753_v45 = vor.u32 %v2975_v44, %v2752_v43  ;;  %v387_v48 = vld [vmem:[%s3505_s15 + $0xa8] sm:$0xff]  ;;  %v440_v50 = vpack.c.bf16 %v388_v47, %v386_v46  ;;  %v390_v52 = vld [vmem:[%s3505_s15 + $0xc0] sm:$0xff]  ;;  %v393_v55 = vld [vmem:[%s3505_s15 + $0xd8] sm:$0xff] }
  0x65   : > { %1489 = vmatpush.bf16.msrb.mxu2 %v2709_v53  ;;  %v441_v51 = vpack.c.bf16 %v389_v49, %v387_v48  ;;  %v392_v53 = vld [vmem:[%s3505_s15 + $0xd0] sm:$0xff]  ;;  %v391_v54 = vld [vmem:[%s3505_s15 + $0xc8] sm:$0xff]  ;;  %v2682_v59 = vld [vmem:[#allocation8 + $0x38] sm:$0xf0] }
  0x66   : > { %1578 = vmatpush.bf16.msrb.mxu3 %v2773_v57  ;;  %v442_v56 = vpack.c.bf16 %v392_v53, %v390_v52  ;;  %v443_v57 = vpack.c.bf16 %v393_v55, %v391_v54  ;;  %v2956_v58 = vld [vmem:[#allocation8 + $0x34] sm:$0xf]  ;;  %v2746_v62 = vld [vmem:[#allocation8 + $0xb8] sm:$0xf0]  ;;  %v2680_v5 = vld [vmem:[#allocation8 + $0x30] sm:$0xf] }
  0x67   : > { %1312 = vmatpush.bf16.msrb.mxu0 %v2697_v18  ;;  %v2972_v60 = vld [vmem:[#allocation8 + $0xb4] sm:$0xf]  ;;  %v2685_v61 = vor.u32 %v2956_v58, %v2682_v59  ;;  %v394_v0 = vld [vmem:[%s3505_s15 + $0xe0] sm:$0xff]  ;;  %v2957_v6 = vld [vmem:[#allocation8 + $0x34] sm:$0xf0] }
  0x68   : > { %1401 = vmatpush.bf16.msrb.mxu1 %v2761_v21  ;;  %v2749_v63 = vor.u32 %v2972_v60, %v2746_v62  ;;  %v396_v1 = vld [vmem:[%s3505_s15 + $0xf0] sm:$0xff]  ;;  %v2973_v10 = vld [vmem:[#allocation8 + $0xb4] sm:$0xf0]  ;;  %v494_v12 = vld [vmem:[#allocation7] sm:$0x3] }
  0x69   : > { %1490 = vmatpush.bf16.msrb.mxu2 %v2701_v13  ;;  %v444_v4 = vpack.c.bf16 %v396_v1, %v394_v0  ;;  %v2744_v7 = vld [vmem:[#allocation8 + $0xb0] sm:$0xf]  ;;  %v398_v13 = vld [vmem:[%s3505_s15 + $0x100] sm:$0xff]  ;;  %v3553_v15 = vperm.slane %v494_v12, 0  ;;  %v399_v16 = vld [vmem:[%s3505_s15 + $0x108] sm:$0xff]  ;;  %v3558_v24 = vperm.slane %v494_v12, 1 }
  0x6a   : > { %1579 = vmatpush.bf16.msrb.mxu3 %v2765_v17  ;;  %v2745_v11 = vor.u32 %v2973_v10, %v2744_v7  ;;  %v400_v14 = vld [vmem:[%s3505_s15 + $0x110] sm:$0xff]  ;;  %v401_v17 = vld [vmem:[%s3505_s15 + $0x118] sm:$0xff]  ;;  %v2954_v25 = vld [vmem:[#allocation8 + $0x24] sm:$0xf] }
  0x6b   : > { %1313 = vmatpush.bf16.msrb.mxu0 %v2689_v42  ;;  %v446_v18 = vpack.c.bf16 %v400_v14, %v398_v13  ;;  %v447_v20 = vpack.c.bf16 %v401_v17, %v399_v16  ;;  %v2970_v28 = vld [vmem:[#allocation8 + $0xa4] sm:$0xf]  ;;  %v2738_v29 = vld [vmem:[#allocation8 + $0xa8] sm:$0xf0]  ;;  %v405_v42 = vld [vmem:[%s3505_s15 + $0x138] sm:$0xff] }
  0x6c   : > { %1402 = vmatpush.bf16.msrb.mxu1 %v2753_v45  ;;  %v2741_v31 = vor.u32 %v2970_v28, %v2738_v29  ;;  %v402_v39 = vld [vmem:[%s3505_s15 + $0x120] sm:$0xff]  ;;  %v404_v40 = vld [vmem:[%s3505_s15 + $0x130] sm:$0xff]  ;;  %v2955_v46 = vld [vmem:[#allocation8 + $0x24] sm:$0xf0] }
  0x6d   : > { %1491 = vmatpush.bf16.msrb.mxu2 %v2693_v37  ;;  %v2672_v45 = vld [vmem:[#allocation8 + $0x20] sm:$0xf]  ;;  %v2971_v49 = vld [vmem:[#allocation8 + $0xa4] sm:$0xf0]  ;;  %v448_v52 = vpack.c.bf16 %v404_v40, %v402_v39  ;;  %v408_v10 = vld [vmem:[%s3505_s15 + $0x150] sm:$0xff] }
  0x6e   : > { %673 = vmatmul.bf16.gmra.mxu0 %v432_v2  ;;  %1580 = vmatpush.bf16.msrb.mxu3 %v2757_v41  ;;  %v403_v41 = vld [vmem:[%s3505_s15 + $0x128] sm:$0xff]  ;;  %v2673_v47 = vor.u32 %v2955_v46, %v2672_v45  ;;  %v2736_v48 = vld [vmem:[#allocation8 + $0xa0] sm:$0xf]  ;;  %v409_v14 = vld [vmem:[%s3505_s15 + $0x158] sm:$0xff] }
  0x6f   : > { %762 = vmatmul.bf16.gmra.mxu1 %v433_v3  ;;  %v2737_v53 = vor.u32 %v2971_v49, %v2736_v48  ;;  %v407_v13 = vld [vmem:[%s3505_s15 + $0x148] sm:$0xff]  ;;  %v410_v45 = vld [vmem:[%s3505_s15 + $0x160] sm:$0xff]  ;;  %v412_v46 = vld [vmem:[%s3505_s15 + $0x170] sm:$0xff] }
  0x70   : > { %851 = vmatmul.bf16.gmra.mxu2 %v432_v2  ;;  %v395_v2 = vld [vmem:[%s3505_s15 + $0xe8] sm:$0xff]  ;;  %1403 = vmatpush.bf16.msrb.mxu1 %v2745_v11  ;;  %v413_v48 = vld [vmem:[%s3505_s15 + $0x178] sm:$0xff] }
  0x71   : > { %940 = vmatmul.bf16.gmra.mxu3 %v433_v3  ;;  %1492 = vmatpush.bf16.msrb.mxu2 %v2685_v61  ;;  %v397_v3 = vld [vmem:[%s3505_s15 + $0xf8] sm:$0xff] }
  0x72   : > { %1581 = vmatpush.bf16.msrb.mxu3 %v2749_v63 }
  0x74   : > { %1404 = vmatpush.bf16.msrb.mxu1 %v2737_v53  ;;  %v2953_v53 = vld [vmem:[#allocation8 + $0x14] sm:$0xf0] }
  0x76   : > { %1582 = vmatpush.bf16.msrb.mxu3 %v2741_v31  ;;  %v2666_v31 = vld [vmem:[#allocation8 + $0x18] sm:$0xf0] }
  0x7e   : > { %678 = vmatmul.bf16.gmra.mxu0 %v434_v8 }
  0x7f   : > { %767 = vmatmul.bf16.gmra.mxu1 %v435_v9 }
  0x80   : > { %856 = vmatmul.bf16.gmra.mxu2 %v434_v8  ;;  %v445_v8 = vpack.c.bf16 %v397_v3, %v395_v2 }
  0x81   : > { %945 = vmatmul.bf16.gmra.mxu3 %v435_v9  ;;  %v2681_v9 = vor.u32 %v2957_v6, %v2680_v5 }
  0x83   : > { %1314 = vmatpush.bf16.msrb.mxu0 %v2681_v9  ;;  %v406_v9 = vld [vmem:[%s3505_s15 + $0x140] sm:$0xff] }
  0x84   : > { %v450_v17 = vpack.c.bf16 %v408_v10, %v406_v9 }
  0x87   : > { %1315 = vmatpush.bf16.msrb.mxu0 %v2673_v47  ;;  %v411_v47 = vld [vmem:[%s3505_s15 + $0x168] sm:$0xff] }
  0x8e   : > { %683 = vmatmul.bf16.gmra.mxu0 %v436_v26 }
  0x8f   : > { %772 = vmatmul.bf16.gmra.mxu1 %v437_v27 }
  0x90   : > { %861 = vmatmul.bf16.gmra.mxu2 %v436_v26  ;;  %v2674_v26 = vld [vmem:[#allocation8 + $0x28] sm:$0xf0] }
  0x91   : > { %950 = vmatmul.bf16.gmra.mxu3 %v437_v27  ;;  %v2677_v27 = vor.u32 %v2954_v25, %v2674_v26 }
  0x93   : > { %1493 = vmatpush.bf16.msrb.mxu2 %v2677_v27 }
  0x9e   : > { %688 = vmatmul.bf16.gmra.mxu0 %v438_v32 }
  0x9f   : > { %777 = vmatmul.bf16.gmra.mxu1 %v439_v33 }
  0xa0   : > { %866 = vmatmul.bf16.gmra.mxu2 %v438_v32 }
  0xa1   : > { %955 = vmatmul.bf16.gmra.mxu3 %v439_v33 }
  0xae   : > { %693 = vmatmul.bf16.gmra.mxu0 %v440_v50 }
  0xaf   : > { %782 = vmatmul.bf16.gmra.mxu1 %v441_v51 }
  0xb0   : > { %871 = vmatmul.bf16.gmra.mxu2 %v440_v50 }
  0xb1   : > { %960 = vmatmul.bf16.gmra.mxu3 %v441_v51 }
  0xbe   : > { %698 = vmatmul.bf16.gmra.mxu0 %v442_v56 }
  0xbf   : > { %787 = vmatmul.bf16.gmra.mxu1 %v443_v57 }
  0xc0   : > { %876 = vmatmul.bf16.gmra.mxu2 %v442_v56 }
  0xc1   : > { %965 = vmatmul.bf16.gmra.mxu3 %v443_v57  ;;  %v449_v57 = vpack.c.bf16 %v405_v42, %v403_v41 }
  0xce   : > { %703 = vmatmul.bf16.gmra.mxu0 %v444_v4 }
  0xcf   : > { %792 = vmatmul.bf16.gmra.mxu1 %v445_v8 }
  0xd0   : > { %881 = vmatmul.bf16.gmra.mxu2 %v444_v4 }
  0xd1   : > { %970 = vmatmul.bf16.gmra.mxu3 %v445_v8 }
  0xdb   : > { %v669_v19 = vpop.f32.mrf.mxu0 }
  0xdc   : > { %v670_v21 = vadd.f32 %v669_v19, %v3553_v15  ;;  %v758_v22 = vpop.f32.mrf.mxu1 }
  0xde   : > { %v759_v23 = vadd.f32 %v758_v22, %v670_v21  ;;  %708 = vmatmul.bf16.gmra.mxu0 %v446_v18  ;;  %v451_v22 = vpack.c.bf16 %v409_v14, %v407_v13 }
  0xdf   : > { %797 = vmatmul.bf16.gmra.mxu1 %v447_v20 }
  0xe0   : > { %886 = vmatmul.bf16.gmra.mxu2 %v446_v18  ;;  %v1016_v43 = vmax.f32 %v759_v23, 0.0 }
  0xe1   : > { %975 = vmatmul.bf16.gmra.mxu3 %v447_v20 }
  0xe3   : > { %v847_v30 = vpop.f32.mrf.mxu2  ;;  %v671_v34 = vpop.f32.mrf.mxu0 }
  0xe4   : > { %v848_v32 = vadd.f32 %v847_v30, %v3558_v24  ;;  %v936_v33 = vpop.f32.mrf.mxu3  ;;  %v672_v35 = vadd.f32 %v671_v34, %v3553_v15  ;;  %v760_v36 = vpop.f32.mrf.mxu1  ;;  %v2952_v30 = vld [vmem:[#allocation8 + $0x14] sm:$0xf]  ;;  %v2730_v34 = vld [vmem:[#allocation8 + $0x98] sm:$0xf0] }
  0xe6   : > { %v937_v37 = vadd.f32 %v936_v33, %v848_v32  ;;  %v761_v38 = vadd.f32 %v760_v36, %v672_v35  ;;  %v2669_v32 = vor.u32 %v2952_v30, %v2666_v31  ;;  %v2968_v33 = vld [vmem:[#allocation8 + $0x94] sm:$0xf] }
  0xe8   : > { %v1018_v44 = vmax.f32 %v761_v38, 0.0  ;;  %v1017_v62 = vmax.f32 %v937_v37, 0.0  ;;  %v2733_v37 = vor.u32 %v2968_v33, %v2730_v34  ;;  %1494 = vmatpush.bf16.msrb.mxu2 %v2669_v32 }
  0xea   : > { %v3566_v50 = vpack.c.bf16 %v1018_v44, %v1016_v43  ;;  %1583 = vmatpush.bf16.msrb.mxu3 %v2733_v37 }
  0xeb   : > { %v849_v51 = vpop.f32.mrf.mxu2  ;;  %v674_v56 = vpop.f32.mrf.mxu0 }
  0xec   : > { %v850_v54 = vadd.f32 %v849_v51, %v3558_v24  ;;  %v938_v55 = vpop.f32.mrf.mxu3  ;;  %v675_v58 = vadd.f32 %v674_v56, %v3553_v15  ;;  %v763_v59 = vpop.f32.mrf.mxu1  ;;  %v2969_v56 = vld [vmem:[#allocation8 + $0x94] sm:$0xf0] }
  0xee   : > { %v939_v60 = vadd.f32 %v938_v55, %v850_v54  ;;  %v764_v61 = vadd.f32 %v763_v59, %v675_v58  ;;  %713 = vmatmul.bf16.gmra.mxu0 %v448_v52  ;;  %v2728_v55 = vld [vmem:[#allocation8 + $0x90] sm:$0xf]  ;;  %v452_v58 = vpack.c.bf16 %v412_v46, %v410_v45 }
  0xef   : > { %802 = vmatmul.bf16.gmra.mxu1 %v449_v57  ;;  %v2729_v59 = vor.u32 %v2969_v56, %v2728_v55  ;;  %v418_v56 = vld [vmem:[%s3505_s15 + $0x1a0] sm:$0xff] }
  0xf0   : > { %v1019_v63 = vmax.f32 %v939_v60, 0.0  ;;  %891 = vmatmul.bf16.gmra.mxu2 %v448_v52  ;;  %v1020_v11 = vmax.f32 %v764_v61, 0.0  ;;  %v2664_v52 = vld [vmem:[#allocation8 + $0x10] sm:$0xf] }
  0xf1   : > { %980 = vmatmul.bf16.gmra.mxu3 %v449_v57  ;;  %v2665_v54 = vor.u32 %v2953_v53, %v2664_v52  ;;  %1405 = vmatpush.bf16.msrb.mxu1 %v2729_v59  ;;  %v421_v59 = vld [vmem:[%s3505_s15 + $0x1b8] sm:$0xff] }
  0xf2   : > { %v3570_v0 = vpack.c.bf16 %v1019_v63, %v1017_v62 }
  0xf3   : > { %v852_v1 = vpop.f32.mrf.mxu2  ;;  %v676_v4 = vpop.f32.mrf.mxu0  ;;  %1316 = vmatpush.bf16.msrb.mxu0 %v2665_v54 }
  0xf4   : > { %v853_v2 = vadd.f32 %v852_v1, %v3558_v24  ;;  %v941_v3 = vpop.f32.mrf.mxu3  ;;  %v677_v5 = vadd.f32 %v676_v4, %v3553_v15  ;;  %v765_v6 = vpop.f32.mrf.mxu1  ;;  %v453_v1 = vpack.c.bf16 %v413_v48, %v411_v47 }
  0xf6   : > { %v942_v7 = vadd.f32 %v941_v3, %v853_v2  ;;  %v766_v8 = vadd.f32 %v765_v6, %v677_v5 }
  0xf8   : > { %v1022_v12 = vmax.f32 %v766_v8, 0.0  ;;  %v1021_v28 = vmax.f32 %v942_v7, 0.0 }
  0xfa   : > { %v3578_v18 = vpack.c.bf16 %v1022_v12, %v1020_v11 }
  0xfb   : > { %v854_v16 = vpop.f32.mrf.mxu2  ;;  %v679_v21 = vpop.f32.mrf.mxu0 }
  0xfc   : > { %v855_v19 = vadd.f32 %v854_v16, %v3558_v24  ;;  %v943_v20 = vpop.f32.mrf.mxu3  ;;  %v680_v23 = vadd.f32 %v679_v21, %v3553_v15  ;;  %v768_v25 = vpop.f32.mrf.mxu1 }
  0xfe   : > { %v944_v26 = vadd.f32 %v943_v20, %v855_v19  ;;  %v769_v27 = vadd.f32 %v768_v25, %v680_v23  ;;  %718 = vmatmul.bf16.gmra.mxu0 %v450_v17  ;;  %v414_v19 = vld [vmem:[%s3505_s15 + $0x180] sm:$0xff]  ;;  %v416_v20 = vld [vmem:[%s3505_s15 + $0x190] sm:$0xff]  ;;  %v415_v23 = vld [vmem:[%s3505_s15 + $0x188] sm:$0xff] }
  0xff   : > { %807 = vmatmul.bf16.gmra.mxu1 %v451_v22  ;;  %v417_v25 = vld [vmem:[%s3505_s15 + $0x198] sm:$0xff] }
 0x100   : > { %v1023_v29 = vmax.f32 %v944_v26, 0.0  ;;  %896 = vmatmul.bf16.gmra.mxu2 %v450_v17  ;;  %v1024_v49 = vmax.f32 %v769_v27, 0.0  ;;  %v454_v27 = vpack.c.bf16 %v416_v20, %v414_v19  ;;  %v455_v32 = vpack.c.bf16 %v417_v25, %v415_v23 }
 0x101   : > { %985 = vmatmul.bf16.gmra.mxu3 %v451_v22 }
 0x102   : > { %v3582_v35 = vpack.c.bf16 %v1023_v29, %v1021_v28 }
 0x103   : > { %v857_v36 = vpop.f32.mrf.mxu2  ;;  %v681_v40 = vpop.f32.mrf.mxu0 }
 0x104   : > { %v858_v38 = vadd.f32 %v857_v36, %v3558_v24  ;;  %v946_v39 = vpop.f32.mrf.mxu3  ;;  %v682_v41 = vadd.f32 %v681_v40, %v3553_v15  ;;  %v770_v42 = vpop.f32.mrf.mxu1  ;;  %v2950_v40 = vld [vmem:[#allocation8 + $0x4] sm:$0xf] }
 0x106   : > { %v947_v43 = vadd.f32 %v946_v39, %v858_v38  ;;  %v771_v44 = vadd.f32 %v770_v42, %v682_v41  ;;  %v2658_v41 = vld [vmem:[#allocation8 + $0x8] sm:$0xf0] }
 0x107   : > { %v2661_v42 = vor.u32 %v2950_v40, %v2658_v41 }
 0x108   : > { %v1026_v51 = vmax.f32 %v771_v44, 0.0  ;;  %v1025_v6 = vmax.f32 %v947_v43, 0.0  ;;  %v2966_v43 = vld [vmem:[#allocation8 + $0x84] sm:$0xf]  ;;  %v2722_v44 = vld [vmem:[#allocation8 + $0x88] sm:$0xf0] }
 0x109   : > { %v2725_v47 = vor.u32 %v2966_v43, %v2722_v44  ;;  %1495 = vmatpush.bf16.msrb.mxu2 %v2661_v42 }
 0x10a   : > { %v3590_v60 = vpack.c.bf16 %v1026_v51, %v1024_v49 }
 0x10b   : > { %v859_v57 = vpop.f32.mrf.mxu2  ;;  %v684_v63 = vpop.f32.mrf.mxu0  ;;  %1584 = vmatpush.bf16.msrb.mxu3 %v2725_v47 }
 0x10c   : > { %v860_v61 = vadd.f32 %v859_v57, %v3558_v24  ;;  %v948_v62 = vpop.f32.mrf.mxu3  ;;  %v685_v2 = vadd.f32 %v684_v63, %v3553_v15  ;;  %v773_v3 = vpop.f32.mrf.mxu1  ;;  %v420_v57 = vld [vmem:[%s3505_s15 + $0x1b0] sm:$0xff]  ;;  %v2656_v63 = vld [vmem:[#allocation8] sm:$0xf] }
 0x10e   : > { %v949_v4 = vadd.f32 %v948_v62, %v860_v61  ;;  %v774_v5 = vadd.f32 %v773_v3, %v685_v2  ;;  %723 = vmatmul.bf16.gmra.mxu0 %v452_v58  ;;  %v2720_v3 = vld [vmem:[#allocation8 + $0x80] sm:$0xf] }
 0x10f   : > { %812 = vmatmul.bf16.gmra.mxu1 %v453_v1 }
 0x110   : > { %v1027_v7 = vmax.f32 %v949_v4, 0.0  ;;  %901 = vmatmul.bf16.gmra.mxu2 %v452_v58  ;;  %v1028_v21 = vmax.f32 %v774_v5, 0.0  ;;  %v419_v58 = vld [vmem:[%s3505_s15 + $0x1a8] sm:$0xff] }
 0x111   : > { %990 = vmatmul.bf16.gmra.mxu3 %v453_v1  ;;  %v2951_v1 = vld [vmem:[#allocation8 + $0x4] sm:$0xf0] }
 0x112   : > { %v3594_v8 = vpack.c.bf16 %v1027_v7, %v1025_v6  ;;  %v2657_v2 = vor.u32 %v2951_v1, %v2656_v63  ;;  %v2967_v4 = vld [vmem:[#allocation8 + $0x84] sm:$0xf0]  ;;  %v456_v6 = vpack.c.bf16 %v420_v57, %v418_v56  ;;  %v2842_v56 = vld [vmem:[#allocation10 + $0x78] sm:$0xf0] }
 0x113   : > { %v862_v9 = vpop.f32.mrf.mxu2  ;;  %v686_v12 = vpop.f32.mrf.mxu0  ;;  %v2721_v7 = vor.u32 %v2967_v4, %v2720_v3 }
 0x114   : > { %v863_v10 = vadd.f32 %v862_v9, %v3558_v24  ;;  %v951_v11 = vpop.f32.mrf.mxu3  ;;  %v687_v13 = vadd.f32 %v686_v12, %v3553_v15  ;;  %v775_v14 = vpop.f32.mrf.mxu1  ;;  %1317 = vmatpush.bf16.msrb.mxu0 %v2657_v2 }
 0x115   : > { %1406 = vmatpush.bf16.msrb.mxu1 %v2721_v7 }
 0x116   : > { %v952_v16 = vadd.f32 %v951_v11, %v863_v10  ;;  %v776_v17 = vadd.f32 %v775_v14, %v687_v13  ;;  %v457_v13 = vpack.c.bf16 %v421_v59, %v419_v58  ;;  %v3012_v58 = vld [vmem:[#allocation10 + $0xf4] sm:$0xf]  ;;  %v2906_v59 = vld [vmem:[#allocation10 + $0xf8] sm:$0xf0] }
 0x117   : > { %v2909_v63 = vor.u32 %v3012_v58, %v2906_v59 }
 0x118   : > { %v1030_v22 = vmax.f32 %v776_v17, 0.0  ;;  %v1029_v38 = vmax.f32 %v952_v16, 0.0 }
 0x119   : > { %2227 = vmatpush.bf16.msra.mxu3 %v2909_v63 }
 0x11a   : > { %v3602_v28 = vpack.c.bf16 %v1030_v22, %v1028_v21 }
 0x11b   : > { %v864_v26 = vpop.f32.mrf.mxu2  ;;  %v689_v31 = vpop.f32.mrf.mxu0 }
 0x11c   : > { %v865_v29 = vadd.f32 %v864_v26, %v3558_v24  ;;  %v953_v30 = vpop.f32.mrf.mxu3  ;;  %v690_v33 = vadd.f32 %v689_v31, %v3553_v15  ;;  %v778_v34 = vpop.f32.mrf.mxu1 }
 0x11e   : > { %v954_v36 = vadd.f32 %v953_v30, %v865_v29  ;;  %v779_v37 = vadd.f32 %v778_v34, %v690_v33  ;;  %728 = vmatmul.bf16.gmra.mxu0 %v454_v27  ;;  %v422_v33 = vld [vmem:[%s3505_s15 + $0x1c0] sm:$0xff]  ;;  %v424_v34 = vld [vmem:[%s3505_s15 + $0x1d0] sm:$0xff] }
 0x11f   : > { %817 = vmatmul.bf16.gmra.mxu1 %v455_v32  ;;  %v458_v41 = vpack.c.bf16 %v424_v34, %v422_v33 }
 0x120   : > { %v1031_v39 = vmax.f32 %v954_v36, 0.0  ;;  %906 = vmatmul.bf16.gmra.mxu2 %v454_v27  ;;  %v1032_v61 = vmax.f32 %v779_v37, 0.0 }
 0x121   : > { %995 = vmatmul.bf16.gmra.mxu3 %v455_v32 }
 0x122   : > { %v3606_v45 = vpack.c.bf16 %v1031_v39, %v1029_v38  ;;  %v423_v38 = vld [vmem:[%s3505_s15 + $0x1c8] sm:$0xff]  ;;  %v425_v39 = vld [vmem:[%s3505_s15 + $0x1d8] sm:$0xff] }
 0x123   : > { %v867_v46 = vpop.f32.mrf.mxu2  ;;  %v691_v51 = vpop.f32.mrf.mxu0  ;;  %v459_v47 = vpack.c.bf16 %v425_v39, %v423_v38 }
 0x124   : > { %v868_v48 = vadd.f32 %v867_v46, %v3558_v24  ;;  %v956_v49 = vpop.f32.mrf.mxu3  ;;  %v692_v52 = vadd.f32 %v691_v51, %v3553_v15  ;;  %v780_v53 = vpop.f32.mrf.mxu1 }
 0x126   : > { %v957_v54 = vadd.f32 %v956_v49, %v868_v48  ;;  %v781_v55 = vadd.f32 %v780_v53, %v692_v52 }
 0x128   : > { %v1034_v62 = vmax.f32 %v781_v55, 0.0  ;;  %v1033_v20 = vmax.f32 %v957_v54, 0.0  ;;  %v2996_v55 = vld [vmem:[#allocation10 + $0x74] sm:$0xf] }
 0x129   : > { %v2845_v57 = vor.u32 %v2996_v55, %v2842_v56 }
 0x12a   : > { %v3614_v9 = vpack.c.bf16 %v1034_v62, %v1032_v61 }
 0x12b   : > { %v869_v5 = vpop.f32.mrf.mxu2  ;;  %v694_v12 = vpop.f32.mrf.mxu0  ;;  %2138 = vmatpush.bf16.msra.mxu2 %v2845_v57 }
 0x12c   : > { %v870_v10 = vadd.f32 %v869_v5, %v3558_v24  ;;  %v958_v11 = vpop.f32.mrf.mxu3  ;;  %v695_v14 = vadd.f32 %v694_v12, %v3553_v15  ;;  %v783_v16 = vpop.f32.mrf.mxu1  ;;  %v427_v12 = vld [vmem:[%s3505_s15 + $0x1e8] sm:$0xff] }
 0x12e   : > { %v959_v17 = vadd.f32 %v958_v11, %v870_v10  ;;  %v784_v19 = vadd.f32 %v783_v16, %v695_v14  ;;  %733 = vmatmul.bf16.gmra.mxu0 %v456_v6  ;;  %v426_v10 = vld [vmem:[%s3505_s15 + $0x1e0] sm:$0xff]  ;;  %v428_v11 = vld [vmem:[%s3505_s15 + $0x1f0] sm:$0xff] }
 0x12f   : > { %822 = vmatmul.bf16.gmra.mxu1 %v457_v13 }
 0x130   : > { %v1035_v21 = vmax.f32 %v959_v17, 0.0  ;;  %911 = vmatmul.bf16.gmra.mxu2 %v456_v6  ;;  %v1036_v36 = vmax.f32 %v784_v19, 0.0  ;;  %v2840_v17 = vld [vmem:[#allocation10 + $0x70] sm:$0xf]  ;;  %v2997_v19 = vld [vmem:[#allocation10 + $0x74] sm:$0xf0] }
 0x131   : > { %1000 = vmatmul.bf16.gmra.mxu3 %v457_v13  ;;  %v429_v13 = vld [vmem:[%s3505_s15 + $0x1f8] sm:$0xff] }
 0x132   : > { %v3618_v22 = vpack.c.bf16 %v1035_v21, %v1033_v20  ;;  %v2841_v20 = vor.u32 %v2997_v19, %v2840_v17  ;;  %v2904_v21 = vld [vmem:[#allocation10 + $0xf0] sm:$0xf]  ;;  %v461_v33 = vpack.c.bf16 %v429_v13, %v427_v12 }
 0x133   : > { %v872_v23 = vpop.f32.mrf.mxu2  ;;  %v696_v27 = vpop.f32.mrf.mxu0 }
 0x134   : > { %v873_v25 = vadd.f32 %v872_v23, %v3558_v24  ;;  %v961_v26 = vpop.f32.mrf.mxu3  ;;  %v697_v29 = vadd.f32 %v696_v27, %v3553_v15  ;;  %v785_v30 = vpop.f32.mrf.mxu1  ;;  %v3013_v23 = vld [vmem:[#allocation10 + $0xf4] sm:$0xf0]  ;;  %1960 = vmatpush.bf16.msra.mxu0 %v2841_v20 }
 0x135   : > { %v2905_v27 = vor.u32 %v3013_v23, %v2904_v21 }
 0x136   : > { %v962_v31 = vadd.f32 %v961_v26, %v873_v25  ;;  %v786_v32 = vadd.f32 %v785_v30, %v697_v29  ;;  %v460_v26 = vpack.c.bf16 %v428_v11, %v426_v10  ;;  %v3010_v10 = vld [vmem:[#allocation10 + $0xe4] sm:$0xf]  ;;  %v2898_v11 = vld [vmem:[#allocation10 + $0xe8] sm:$0xf0] }
 0x137   : > { %2049 = vmatpush.bf16.msra.mxu1 %v2905_v27  ;;  %v2995_v27 = vld [vmem:[#allocation10 + $0x64] sm:$0xf0] }
 0x138   : > { %v1038_v37 = vmax.f32 %v786_v32, 0.0  ;;  %v1037_v53 = vmax.f32 %v962_v31, 0.0 }
 0x13a   : > { %v3626_v42 = vpack.c.bf16 %v1038_v37, %v1036_v36 }
 0x13b   : > { %v874_v40 = vpop.f32.mrf.mxu2  ;;  %v699_v46 = vpop.f32.mrf.mxu0 }
 0x13c   : > { %v875_v43 = vadd.f32 %v874_v40, %v3558_v24  ;;  %v963_v44 = vpop.f32.mrf.mxu3  ;;  %v700_v48 = vadd.f32 %v699_v46, %v3553_v15  ;;  %v788_v49 = vpop.f32.mrf.mxu1 }
 0x13e   : > { %v964_v51 = vadd.f32 %v963_v44, %v875_v43  ;;  %v789_v52 = vadd.f32 %v788_v49, %v700_v48  ;;  %738 = vmatmul.bf16.gmra.mxu0 %v458_v41 }
 0x13f   : > { %827 = vmatmul.bf16.gmra.mxu1 %v459_v47 }
 0x140   : > { %v1039_v54 = vmax.f32 %v964_v51, 0.0  ;;  %916 = vmatmul.bf16.gmra.mxu2 %v458_v41  ;;  %v1040_v14 = vmax.f32 %v789_v52, 0.0 }
 0x141   : > { %1005 = vmatmul.bf16.gmra.mxu3 %v459_v47 }
 0x142   : > { %v3630_v61 = vpack.c.bf16 %v1039_v54, %v1037_v53 }
 0x143   : > { %v877_v62 = vpop.f32.mrf.mxu2  ;;  %v701_v3 = vpop.f32.mrf.mxu0 }
 0x144   : > { %v878_v1 = vadd.f32 %v877_v62, %v3558_v24  ;;  %v966_v2 = vpop.f32.mrf.mxu3  ;;  %v702_v4 = vadd.f32 %v701_v3, %v3553_v15  ;;  %v790_v5 = vpop.f32.mrf.mxu1 }
 0x146   : > { %v967_v6 = vadd.f32 %v966_v2, %v878_v1  ;;  %v791_v7 = vadd.f32 %v790_v5, %v702_v4  ;;  %v2994_v5 = vld [vmem:[#allocation10 + $0x64] sm:$0xf] }
 0x148   : > { %v1042_v16 = vmax.f32 %v791_v7, 0.0  ;;  %v1041_v39 = vmax.f32 %v967_v6, 0.0  ;;  %v2834_v6 = vld [vmem:[#allocation10 + $0x68] sm:$0xf0] }
 0x149   : > { %v2837_v7 = vor.u32 %v2994_v5, %v2834_v6 }
 0x14a   : > { %v3638_v29 = vpack.c.bf16 %v1042_v16, %v1040_v14  ;;  %v2901_v14 = vor.u32 %v3010_v10, %v2898_v11 }
 0x14b   : > { %v879_v25 = vpop.f32.mrf.mxu2  ;;  %v704_v32 = vpop.f32.mrf.mxu0  ;;  %2139 = vmatpush.bf16.msra.mxu2 %v2837_v7 }
 0x14c   : > { %v880_v30 = vadd.f32 %v879_v25, %v3558_v24  ;;  %v968_v31 = vpop.f32.mrf.mxu3  ;;  %v705_v34 = vadd.f32 %v704_v32, %v3553_v15  ;;  %v793_v36 = vpop.f32.mrf.mxu1  ;;  %2228 = vmatpush.bf16.msra.mxu3 %v2901_v14  ;;  %v3011_v32 = vld [vmem:[#allocation10 + $0xe4] sm:$0xf0]  ;;  %v2826_v14 = vld [vmem:[#allocation10 + $0x58] sm:$0xf0] }
 0x14e   : > { %v969_v37 = vadd.f32 %v968_v31, %v880_v30  ;;  %v794_v38 = vadd.f32 %v793_v36, %v705_v34  ;;  %743 = vmatmul.bf16.gmra.mxu0 %v460_v26  ;;  %v2896_v31 = vld [vmem:[#allocation10 + $0xe0] sm:$0xf] }
 0x14f   : > { %832 = vmatmul.bf16.gmra.mxu1 %v461_v33  ;;  %v2897_v34 = vor.u32 %v3011_v32, %v2896_v31  ;;  %v2824_v32 = vld [vmem:[#allocation10 + $0x50] sm:$0xf] }
 0x150   : > { %v1043_v40 = vmax.f32 %v969_v37, 0.0  ;;  %921 = vmatmul.bf16.gmra.mxu2 %v460_v26  ;;  %v1044_v53 = vmax.f32 %v794_v38, 0.0  ;;  %v2832_v26 = vld [vmem:[#allocation10 + $0x60] sm:$0xf] }
 0x151   : > { %1010 = vmatmul.bf16.gmra.mxu3 %v461_v33  ;;  %v2833_v30 = vor.u32 %v2995_v27, %v2832_v26  ;;  %2050 = vmatpush.bf16.msra.mxu1 %v2897_v34 }
 0x152   : > { %v3642_v41 = vpack.c.bf16 %v1043_v40, %v1041_v39 }
 0x153   : > { %v882_v43 = vpop.f32.mrf.mxu2  ;;  %v706_v47 = vpop.f32.mrf.mxu0  ;;  %1961 = vmatpush.bf16.msra.mxu0 %v2833_v30 }
 0x154   : > { %v883_v44 = vadd.f32 %v882_v43, %v3558_v24  ;;  %v971_v46 = vpop.f32.mrf.mxu3  ;;  %v707_v48 = vadd.f32 %v706_v47, %v3553_v15  ;;  %v795_v49 = vpop.f32.mrf.mxu1 }
 0x156   : > { %v972_v51 = vadd.f32 %v971_v46, %v883_v44  ;;  %v796_v52 = vadd.f32 %v795_v49, %v707_v48 }
 0x158   : > { %v1046_v54 = vmax.f32 %v796_v52, 0.0  ;;  %v1045_v3 = vmax.f32 %v972_v51, 0.0 }
 0x15a   : > { %v3646_v56 = vpack.c.bf16 %v1046_v54, %v1044_v53 }
 0x15b   : > { %v884_v55 = vpop.f32.mrf.mxu2  ;;  %v709_v59 = vpop.f32.mrf.mxu0 }
 0x15c   : > { %v885_v57 = vadd.f32 %v884_v55, %v3558_v24  ;;  %v973_v58 = vpop.f32.mrf.mxu3  ;;  %v710_v62 = vadd.f32 %v709_v59, %v3553_v15  ;;  %v798_v63 = vpop.f32.mrf.mxu1 }
 0x15e   : > { %v974_v1 = vadd.f32 %v973_v58, %v885_v57  ;;  %v799_v2 = vadd.f32 %v798_v63, %v710_v62  ;;  %1318 = vmatmul.bf16.vlgmr.msrb.gmra.mxu0 %v3566_v50 }
 0x15f   : > { %1407 = vmatmul.bf16.vlgmr.msrb.gmra.mxu1 %v3570_v0 }
 0x160   : > { %v1047_v4 = vmax.f32 %v974_v1, 0.0  ;;  %1496 = vmatmul.bf16.vlgmr.msrb.gmra.mxu2 %v3566_v50  ;;  %v1048_v23 = vmax.f32 %v799_v2, 0.0 }
 0x161   : > { %1585 = vmatmul.bf16.vlgmr.msrb.gmra.mxu3 %v3570_v0 }
 0x162   : > { %v3654_v12 = vpack.c.bf16 %v1047_v4, %v1045_v3 }
 0x163   : > { %v887_v13 = vpop.f32.mrf.mxu2  ;;  %v711_v19 = vpop.f32.mrf.mxu0 }
 0x164   : > { %v888_v16 = vadd.f32 %v887_v13, %v3558_v24  ;;  %v976_v17 = vpop.f32.mrf.mxu3  ;;  %v712_v20 = vadd.f32 %v711_v19, %v3553_v15  ;;  %v800_v21 = vpop.f32.mrf.mxu1  ;;  %v2992_v13 = vld [vmem:[#allocation10 + $0x54] sm:$0xf]  ;;  %v2890_v19 = vld [vmem:[#allocation10 + $0xd8] sm:$0xf0] }
 0x166   : > { %v977_v50 = vadd.f32 %v976_v17, %v888_v16  ;;  %v801_v0 = vadd.f32 %v800_v21, %v712_v20  ;;  %v2829_v16 = vor.u32 %v2992_v13, %v2826_v14  ;;  %v3008_v17 = vld [vmem:[#allocation10 + $0xd4] sm:$0xf] }
 0x168   : > { %v1050_v25 = vmax.f32 %v801_v0, 0.0  ;;  %v1049_v47 = vmax.f32 %v977_v50, 0.0  ;;  %v2893_v50 = vor.u32 %v3008_v17, %v2890_v19  ;;  %2140 = vmatpush.bf16.msra.mxu2 %v2829_v16 }
 0x16a   : > { %v3658_v36 = vpack.c.bf16 %v1050_v25, %v1048_v23  ;;  %2229 = vmatpush.bf16.msra.mxu3 %v2893_v50  ;;  %v2818_v50 = vld [vmem:[#allocation10 + $0x48] sm:$0xf0] }
 0x16b   : > { %v889_v33 = vpop.f32.mrf.mxu2  ;;  %v714_v39 = vpop.f32.mrf.mxu0 }
 0x16c   : > { %v890_v37 = vadd.f32 %v889_v33, %v3558_v24  ;;  %v978_v38 = vpop.f32.mrf.mxu3  ;;  %v715_v40 = vadd.f32 %v714_v39, %v3553_v15  ;;  %v803_v43 = vpop.f32.mrf.mxu1  ;;  %v2993_v33 = vld [vmem:[#allocation10 + $0x54] sm:$0xf0] }
 0x16d   : > { %v2825_v34 = vor.u32 %v2993_v33, %v2824_v32 }
 0x16e   : > { %v979_v44 = vadd.f32 %v978_v38, %v890_v37  ;;  %v804_v46 = vadd.f32 %v803_v43, %v715_v40  ;;  %1323 = vmatmul.bf16.gmra.mxu0 %v3578_v18  ;;  %v2888_v37 = vld [vmem:[#allocation10 + $0xd0] sm:$0xf]  ;;  %v3009_v38 = vld [vmem:[#allocation10 + $0xd4] sm:$0xf0] }
 0x16f   : > { %1412 = vmatmul.bf16.gmra.mxu1 %v3582_v35  ;;  %v2889_v40 = vor.u32 %v3009_v38, %v2888_v37  ;;  %1962 = vmatpush.bf16.msra.mxu0 %v2825_v34  ;;  %v2816_v38 = vld [vmem:[#allocation10 + $0x40] sm:$0xf] }
 0x170   : > { %v1051_v48 = vmax.f32 %v979_v44, 0.0  ;;  %1501 = vmatmul.bf16.gmra.mxu2 %v3578_v18  ;;  %v1052_v62 = vmax.f32 %v804_v46, 0.0 }
 0x171   : > { %1590 = vmatmul.bf16.gmra.mxu3 %v3582_v35  ;;  %2051 = vmatpush.bf16.msra.mxu1 %v2889_v40 }
 0x172   : > { %v3666_v49 = vpack.c.bf16 %v1051_v48, %v1049_v47 }
 0x173   : > { %v892_v51 = vpop.f32.mrf.mxu2  ;;  %v716_v54 = vpop.f32.mrf.mxu0 }
 0x174   : > { %v893_v52 = vadd.f32 %v892_v51, %v3558_v24  ;;  %v981_v53 = vpop.f32.mrf.mxu3  ;;  %v717_v55 = vadd.f32 %v716_v54, %v3553_v15  ;;  %v805_v57 = vpop.f32.mrf.mxu1 }
 0x176   : > { %v982_v58 = vadd.f32 %v981_v53, %v893_v52  ;;  %v806_v59 = vadd.f32 %v805_v57, %v717_v55 }
 0x178   : > { %v1054_v63 = vmax.f32 %v806_v59, 0.0  ;;  %v1053_v10 = vmax.f32 %v982_v58, 0.0 }
 0x17a   : > { %v3670_v2 = vpack.c.bf16 %v1054_v63, %v1052_v62 }
 0x17b   : > { %v894_v1 = vpop.f32.mrf.mxu2  ;;  %v719_v3 = vpop.f32.mrf.mxu0 }
 0x17c   : > { %v895_v18 = vadd.f32 %v894_v1, %v3558_v24  ;;  %v983_v35 = vpop.f32.mrf.mxu3  ;;  %v720_v4 = vadd.f32 %v719_v3, %v3553_v15  ;;  %v808_v5 = vpop.f32.mrf.mxu1 }
 0x17e   : > { %v984_v6 = vadd.f32 %v983_v35, %v895_v18  ;;  %v809_v7 = vadd.f32 %v808_v5, %v720_v4  ;;  %1328 = vmatmul.bf16.gmra.mxu0 %v3590_v60 }
 0x17f   : > { %1417 = vmatmul.bf16.gmra.mxu1 %v3594_v8 }
 0x180   : > { %v1055_v11 = vmax.f32 %v984_v6, 0.0  ;;  %1506 = vmatmul.bf16.gmra.mxu2 %v3590_v60  ;;  %v1056_v30 = vmax.f32 %v809_v7, 0.0 }
 0x181   : > { %1595 = vmatmul.bf16.gmra.mxu3 %v3594_v8 }
 0x182   : > { %v3678_v20 = vpack.c.bf16 %v1055_v11, %v1053_v10 }
 0x183   : > { %v897_v21 = vpop.f32.mrf.mxu2  ;;  %v721_v25 = vpop.f32.mrf.mxu0 }
 0x184   : > { %v898_v0 = vadd.f32 %v897_v21, %v3558_v24  ;;  %v986_v23 = vpop.f32.mrf.mxu3  ;;  %v722_v26 = vadd.f32 %v721_v25, %v3553_v15  ;;  %v810_v27 = vpop.f32.mrf.mxu1  ;;  %v2990_v21 = vld [vmem:[#allocation10 + $0x44] sm:$0xf]  ;;  %v2882_v25 = vld [vmem:[#allocation10 + $0xc8] sm:$0xf0] }
 0x186   : > { %v987_v60 = vadd.f32 %v986_v23, %v898_v0  ;;  %v811_v8 = vadd.f32 %v810_v27, %v722_v26  ;;  %v2821_v0 = vor.u32 %v2990_v21, %v2818_v50  ;;  %v3006_v23 = vld [vmem:[#allocation10 + $0xc4] sm:$0xf] }
 0x188   : > { %v1058_v31 = vmax.f32 %v811_v8, 0.0  ;;  %v1057_v54 = vmax.f32 %v987_v60, 0.0  ;;  %v2885_v60 = vor.u32 %v3006_v23, %v2882_v25  ;;  %2141 = vmatpush.bf16.msra.mxu2 %v2821_v0 }
 0x18a   : > { %v3682_v43 = vpack.c.bf16 %v1058_v31, %v1056_v30  ;;  %2230 = vmatpush.bf16.msra.mxu3 %v2885_v60  ;;  %v2810_v60 = vld [vmem:[#allocation10 + $0x38] sm:$0xf0] }
 0x18b   : > { %v899_v39 = vpop.f32.mrf.mxu2  ;;  %v724_v47 = vpop.f32.mrf.mxu0 }
 0x18c   : > { %v900_v44 = vadd.f32 %v899_v39, %v3558_v24  ;;  %v988_v46 = vpop.f32.mrf.mxu3  ;;  %v725_v48 = vadd.f32 %v724_v47, %v3553_v15  ;;  %v813_v51 = vpop.f32.mrf.mxu1  ;;  %v2991_v39 = vld [vmem:[#allocation10 + $0x44] sm:$0xf0] }
 0x18d   : > { %v2817_v40 = vor.u32 %v2991_v39, %v2816_v38 }
 0x18e   : > { %v989_v52 = vadd.f32 %v988_v46, %v900_v44  ;;  %v814_v53 = vadd.f32 %v813_v51, %v725_v48  ;;  %1333 = vmatmul.bf16.gmra.mxu0 %v3602_v28  ;;  %v2880_v44 = vld [vmem:[#allocation10 + $0xc0] sm:$0xf]  ;;  %v3007_v46 = vld [vmem:[#allocation10 + $0xc4] sm:$0xf0] }
 0x18f   : > { %1422 = vmatmul.bf16.gmra.mxu1 %v3606_v45  ;;  %v2881_v48 = vor.u32 %v3007_v46, %v2880_v44  ;;  %1963 = vmatpush.bf16.msra.mxu0 %v2817_v40 }
 0x190   : > { %v1059_v55 = vmax.f32 %v989_v52, 0.0  ;;  %1511 = vmatmul.bf16.gmra.mxu2 %v3602_v28  ;;  %v1060_v4 = vmax.f32 %v814_v53, 0.0 }
 0x191   : > { %1600 = vmatmul.bf16.gmra.mxu3 %v3606_v45  ;;  %2052 = vmatpush.bf16.msra.mxu1 %v2881_v48  ;;  %v2989_v48 = vld [vmem:[#allocation10 + $0x34] sm:$0xf0] }
 0x192   : > { %v3690_v57 = vpack.c.bf16 %v1059_v55, %v1057_v54 }
 0x193   : > { %v902_v58 = vpop.f32.mrf.mxu2  ;;  %v726_v63 = vpop.f32.mrf.mxu0 }
 0x194   : > { %v903_v59 = vadd.f32 %v902_v58, %v3558_v24  ;;  %v991_v62 = vpop.f32.mrf.mxu3  ;;  %v727_v1 = vadd.f32 %v726_v63, %v3553_v15  ;;  %v815_v18 = vpop.f32.mrf.mxu1 }
 0x196   : > { %v992_v35 = vadd.f32 %v991_v62, %v903_v59  ;;  %v816_v3 = vadd.f32 %v815_v18, %v727_v1 }
 0x198   : > { %v1062_v5 = vmax.f32 %v816_v3, 0.0  ;;  %v1061_v17 = vmax.f32 %v992_v35, 0.0 }
 0x19a   : > { %v3694_v7 = vpack.c.bf16 %v1062_v5, %v1060_v4 }
 0x19b   : > { %v904_v6 = vpop.f32.mrf.mxu2  ;;  %v729_v10 = vpop.f32.mrf.mxu0 }
 0x19c   : > { %v905_v28 = vadd.f32 %v904_v6, %v3558_v24  ;;  %v993_v45 = vpop.f32.mrf.mxu3  ;;  %v730_v11 = vadd.f32 %v729_v10, %v3553_v15  ;;  %v818_v13 = vpop.f32.mrf.mxu1 }
 0x19e   : > { %v994_v14 = vadd.f32 %v993_v45, %v905_v28  ;;  %v819_v16 = vadd.f32 %v818_v13, %v730_v11  ;;  %1338 = vmatmul.bf16.gmra.mxu0 %v3614_v9 }
 0x19f   : > { %1427 = vmatmul.bf16.gmra.mxu1 %v3618_v22 }
 0x1a0   : > { %v1063_v19 = vmax.f32 %v994_v14, 0.0  ;;  %1516 = vmatmul.bf16.gmra.mxu2 %v3614_v9  ;;  %v1064_v34 = vmax.f32 %v819_v16, 0.0 }
 0x1a1   : > { %1605 = vmatmul.bf16.gmra.mxu3 %v3618_v22 }
 0x1a2   : > { %v3702_v26 = vpack.c.bf16 %v1063_v19, %v1061_v17 }
 0x1a3   : > { %v907_v27 = vpop.f32.mrf.mxu2  ;;  %v731_v31 = vpop.f32.mrf.mxu0 }
 0x1a4   : > { %v908_v8 = vadd.f32 %v907_v27, %v3558_v24  ;;  %v996_v30 = vpop.f32.mrf.mxu3  ;;  %v732_v32 = vadd.f32 %v731_v31, %v3553_v15  ;;  %v820_v33 = vpop.f32.mrf.mxu1  ;;  %v2988_v27 = vld [vmem:[#allocation10 + $0x34] sm:$0xf]  ;;  %v2874_v31 = vld [vmem:[#allocation10 + $0xb8] sm:$0xf0] }
 0x1a6   : > { %v997_v9 = vadd.f32 %v996_v30, %v908_v8  ;;  %v821_v22 = vadd.f32 %v820_v33, %v732_v32  ;;  %v2813_v8 = vor.u32 %v2988_v27, %v2810_v60  ;;  %v3004_v30 = vld [vmem:[#allocation10 + $0xb4] sm:$0xf] }
 0x1a8   : > { %v1066_v37 = vmax.f32 %v821_v22, 0.0  ;;  %v1065_v63 = vmax.f32 %v997_v9, 0.0  ;;  %v2877_v9 = vor.u32 %v3004_v30, %v2874_v31  ;;  %2142 = vmatpush.bf16.msra.mxu2 %v2813_v8 }
 0x1aa   : > { %v3706_v51 = vpack.c.bf16 %v1066_v37, %v1064_v34  ;;  %2231 = vmatpush.bf16.msra.mxu3 %v2877_v9 }
 0x1ab   : > { %v909_v47 = vpop.f32.mrf.mxu2  ;;  %v734_v54 = vpop.f32.mrf.mxu0 }
 0x1ac   : > { %v910_v52 = vadd.f32 %v909_v47, %v3558_v24  ;;  %v998_v53 = vpop.f32.mrf.mxu3  ;;  %v735_v55 = vadd.f32 %v734_v54, %v3553_v15  ;;  %v823_v58 = vpop.f32.mrf.mxu1  ;;  %v2808_v47 = vld [vmem:[#allocation10 + $0x30] sm:$0xf] }
 0x1ae   : > { %v999_v59 = vadd.f32 %v998_v53, %v910_v52  ;;  %v824_v62 = vadd.f32 %v823_v58, %v735_v55  ;;  %1343 = vmatmul.bf16.gmra.mxu0 %v3626_v42  ;;  %v2872_v52 = vld [vmem:[#allocation10 + $0xb0] sm:$0xf] }
 0x1af   : > { %1432 = vmatmul.bf16.gmra.mxu1 %v3630_v61 }
 0x1b0   : > { %v1067_v1 = vmax.f32 %v999_v59, 0.0  ;;  %1521 = vmatmul.bf16.gmra.mxu2 %v3626_v42  ;;  %v1068_v11 = vmax.f32 %v824_v62, 0.0  ;;  %v2809_v59 = vor.u32 %v2989_v48, %v2808_v47  ;;  %v3005_v62 = vld [vmem:[#allocation10 + $0xb4] sm:$0xf0] }
 0x1b1   : > { %1610 = vmatmul.bf16.gmra.mxu3 %v3630_v61 }
 0x1b2   : > { %v3714_v18 = vpack.c.bf16 %v1067_v1, %v1065_v63  ;;  %1964 = vmatpush.bf16.msra.mxu0 %v2809_v59 }
 0x1b3   : > { %v912_v35 = vpop.f32.mrf.mxu2  ;;  %v736_v5 = vpop.f32.mrf.mxu0 }
 0x1b4   : > { %v913_v3 = vadd.f32 %v912_v35, %v3558_v24  ;;  %v1001_v4 = vpop.f32.mrf.mxu3  ;;  %v737_v6 = vadd.f32 %v736_v5, %v3553_v15  ;;  %v825_v28 = vpop.f32.mrf.mxu1  ;;  %v2873_v35 = vor.u32 %v3005_v62, %v2872_v52  ;;  %v2864_v62 = vld [vmem:[#allocation10 + $0xa0] sm:$0xf] }
 0x1b6   : > { %v1002_v45 = vadd.f32 %v1001_v4, %v913_v3  ;;  %v826_v10 = vadd.f32 %v825_v28, %v737_v6  ;;  %2053 = vmatpush.bf16.msra.mxu1 %v2873_v35 }
 0x1b8   : > { %v1070_v13 = vmax.f32 %v826_v10, 0.0  ;;  %v1069_v23 = vmax.f32 %v1002_v45, 0.0 }
 0x1ba   : > { %v3718_v16 = vpack.c.bf16 %v1070_v13, %v1068_v11 }
 0x1bb   : > { %v914_v14 = vpop.f32.mrf.mxu2  ;;  %v739_v17 = vpop.f32.mrf.mxu0 }
 0x1bc   : > { %v915_v42 = vadd.f32 %v914_v14, %v3558_v24  ;;  %v1003_v61 = vpop.f32.mrf.mxu3  ;;  %v740_v19 = vadd.f32 %v739_v17, %v3553_v15  ;;  %v828_v21 = vpop.f32.mrf.mxu1  ;;  %v1144_v17 = vld [vmem:[%s4155_s4] sm:$0x3] }
 0x1bd   : > { %v3754_v9 = vperm.slane %v1144_v17, 1 }
 0x1be   : > { %v1004_v50 = vadd.f32 %v1003_v61, %v915_v42  ;;  %v829_v0 = vadd.f32 %v828_v21, %v740_v19  ;;  %1348 = vmatmul.bf16.gmra.mxu0 %v3638_v29 }
 0x1bf   : > { %1437 = vmatmul.bf16.gmra.mxu1 %v3642_v41 }
 0x1c0   : > { %v1071_v25 = vmax.f32 %v1004_v50, 0.0  ;;  %1526 = vmatmul.bf16.gmra.mxu2 %v3638_v29  ;;  %v1072_v40 = vmax.f32 %v829_v0, 0.0  ;;  %v3745_v50 = vperm.slane %v1144_v17, 0 }
 0x1c1   : > { %1615 = vmatmul.bf16.gmra.mxu3 %v3642_v41 }
 0x1c2   : > { %v3726_v32 = vpack.c.bf16 %v1071_v25, %v1069_v23 }
 0x1c3   : > { %v917_v33 = vpop.f32.mrf.mxu2  ;;  %v741_v37 = vpop.f32.mrf.mxu0 }
 0x1c4   : > { %v918_v22 = vadd.f32 %v917_v33, %v3558_v24  ;;  %v1006_v34 = vpop.f32.mrf.mxu3  ;;  %v742_v38 = vadd.f32 %v741_v37, %v3553_v15  ;;  %v830_v39 = vpop.f32.mrf.mxu1  ;;  %v3002_v37 = vld [vmem:[#allocation10 + $0xa4] sm:$0xf] }
 0x1c6   : > { %v1007_v29 = vadd.f32 %v1006_v34, %v918_v22  ;;  %v831_v41 = vadd.f32 %v830_v39, %v742_v38  ;;  %v2802_v22 = vld [vmem:[#allocation10 + $0x28] sm:$0xf0] }
 0x1c7   : > { %v2866_v38 = vld [vmem:[#allocation10 + $0xa8] sm:$0xf0] }
 0x1c8   : > { %v1074_v44 = vmax.f32 %v831_v41, 0.0  ;;  %v1073_v5 = vmax.f32 %v1007_v29, 0.0  ;;  %v2869_v41 = vor.u32 %v3002_v37, %v2866_v38 }
 0x1ca   : > { %v3730_v53 = vpack.c.bf16 %v1074_v44, %v1072_v40  ;;  %2232 = vmatpush.bf16.msra.mxu3 %v2869_v41  ;;  %v2794_v41 = vld [vmem:[#allocation10 + $0x18] sm:$0xf0] }
 0x1cb   : > { %v919_v46 = vpop.f32.mrf.mxu2  ;;  %v744_v58 = vpop.f32.mrf.mxu0 }
 0x1cc   : > { %v920_v54 = vadd.f32 %v919_v46, %v3558_v24  ;;  %v1008_v55 = vpop.f32.mrf.mxu3  ;;  %v745_v63 = vadd.f32 %v744_v58, %v3553_v15  ;;  %v833_v1 = vpop.f32.mrf.mxu1  ;;  %v2987_v58 = vld [vmem:[#allocation10 + $0x24] sm:$0xf0] }
 0x1ce   : > { %v1009_v3 = vadd.f32 %v1008_v55, %v920_v54  ;;  %v834_v4 = vadd.f32 %v833_v1, %v745_v63  ;;  %1353 = vmatmul.bf16.gmra.mxu0 %v3646_v56  ;;  %v2800_v55 = vld [vmem:[#allocation10 + $0x20] sm:$0xf]  ;;  %v3003_v63 = vld [vmem:[#allocation10 + $0xa4] sm:$0xf0] }
 0x1cf   : > { %1442 = vmatmul.bf16.gmra.mxu1 %v3654_v12  ;;  %v2801_v59 = vor.u32 %v2987_v58, %v2800_v55 }
 0x1d0   : > { %v1075_v6 = vmax.f32 %v1009_v3, 0.0  ;;  %1531 = vmatmul.bf16.gmra.mxu2 %v3646_v56  ;;  %v1076_v21 = vmax.f32 %v834_v4, 0.0  ;;  %v2865_v3 = vor.u32 %v3003_v63, %v2864_v62  ;;  %v2792_v63 = vld [vmem:[#allocation10 + $0x10] sm:$0xf] }
 0x1d1   : > { %1620 = vmatmul.bf16.gmra.mxu3 %v3654_v12  ;;  %1965 = vmatpush.bf16.msra.mxu0 %v2801_v59 }
 0x1d2   : > { %v3738_v28 = vpack.c.bf16 %v1075_v6, %v1073_v5  ;;  %2054 = vmatpush.bf16.msra.mxu1 %v2865_v3 }
 0x1d3   : > { %v922_v45 = vpop.f32.mrf.mxu2  ;;  %v746_v13 = vpop.f32.mrf.mxu0 }
 0x1d4   : > { %v923_v10 = vadd.f32 %v922_v45, %v3558_v24  ;;  %v1011_v11 = vpop.f32.mrf.mxu3  ;;  %v747_v14 = vadd.f32 %v746_v13, %v3553_v15  ;;  %v835_v42 = vpop.f32.mrf.mxu1 }
 0x1d6   : > { %v1012_v61 = vadd.f32 %v1011_v11, %v923_v10  ;;  %v836_v19 = vadd.f32 %v835_v42, %v747_v14 }
 0x1d8   : > { %v1078_v56 = vmax.f32 %v836_v19, 0.0  ;;  %v1077_v31 = vmax.f32 %v1012_v61, 0.0 }
 0x1da   : > { %v3747_v0 = vpack.c.bf16 %v1078_v56, %v1076_v21 }
 0x1db   : > { %v924_v12 = vpop.f32.mrf.mxu2  ;;  %v1319_v27 = vpop.f32.mrf.mxu0 }
 0x1dc   : > { %v925_v23 = vadd.f32 %v924_v12, %v3558_v24  ;;  %v1013_v25 = vpop.f32.mrf.mxu3  ;;  %v1320_v15 = vadd.f32 %v1319_v27, %v3745_v50  ;;  %v1408_v60 = vpop.f32.mrf.mxu1  ;;  %v2986_v24 = vld [vmem:[#allocation10 + $0x24] sm:$0xf] }
 0x1dd   : > { %v2805_v34 = vor.u32 %v2986_v24, %v2802_v22 }
 0x1de   : > { %v1014_v8 = vadd.f32 %v1013_v25, %v925_v23  ;;  %v1409_v30 = vadd.f32 %v1408_v60, %v1320_v15  ;;  %1358 = vmatmul.bf16.gmra.mxu0 %v3658_v36 }
 0x1df   : > { %1447 = vmatmul.bf16.gmra.mxu1 %v3666_v49  ;;  %2143 = vmatpush.bf16.msra.mxu2 %v2805_v34 }
 0x1e0   : > { %v1079_v33 = vmax.f32 %v1014_v8, 0.0  ;;  %1536 = vmatmul.bf16.gmra.mxu2 %v3658_v36  ;;  %v1666_v52 = vmax.f32 %v1409_v30, 0.0 }
 0x1e1   : > { %1625 = vmatmul.bf16.gmra.mxu3 %v3666_v49 }
 0x1e2   : > { %v3757_v39 = vpack.c.bf16 %v1079_v33, %v1077_v31 }
 0x1e3   : > { %v1497_v29 = vpop.f32.mrf.mxu2  ;;  %v1321_v46 = vpop.f32.mrf.mxu0 }
 0x1e4   : > { %v1498_v40 = vadd.f32 %v1497_v29, %v3754_v9  ;;  %v1586_v44 = vpop.f32.mrf.mxu3  ;;  %v1322_v36 = vadd.f32 %v1321_v46, %v3745_v50  ;;  %v1410_v47 = vpop.f32.mrf.mxu1  ;;  %v2984_v29 = vld [vmem:[#allocation10 + $0x14] sm:$0xf]  ;;  %v2858_v46 = vld [vmem:[#allocation10 + $0x98] sm:$0xf0] }
 0x1e6   : > { %v1587_v48 = vadd.f32 %v1586_v44, %v1498_v40  ;;  %v1411_v49 = vadd.f32 %v1410_v47, %v1322_v36  ;;  %v2797_v40 = vor.u32 %v2984_v29, %v2794_v41  ;;  %v3000_v44 = vld [vmem:[#allocation10 + $0x94] sm:$0xf] }
 0x1e8   : > { %v1668_v54 = vmax.f32 %v1411_v49, 0.0  ;;  %v1667_v14 = vmax.f32 %v1587_v48, 0.0  ;;  %v2861_v48 = vor.u32 %v3000_v44, %v2858_v46  ;;  %2144 = vmatpush.bf16.msra.mxu2 %v2797_v40 }
 0x1ea   : > { %v3761_v1 = vpack.c.bf16 %v1668_v54, %v1666_v52  ;;  %2233 = vmatpush.bf16.msra.mxu3 %v2861_v48  ;;  %v2786_v48 = vld [vmem:[#allocation10 + $0x8] sm:$0xf0] }
 0x1eb   : > { %v1499_v35 = vpop.f32.mrf.mxu2  ;;  %v1324_v6 = vpop.f32.mrf.mxu0 }
 0x1ec   : > { %v1500_v4 = vadd.f32 %v1499_v35, %v3754_v9  ;;  %v1588_v5 = vpop.f32.mrf.mxu3  ;;  %v1325_v45 = vadd.f32 %v1324_v6, %v3745_v50  ;;  %v1413_v10 = vpop.f32.mrf.mxu1  ;;  %v2985_v35 = vld [vmem:[#allocation10 + $0x14] sm:$0xf0] }
 0x1ed   : > { %v2793_v3 = vor.u32 %v2985_v35, %v2792_v63 }
 0x1ee   : > { %v1589_v11 = vadd.f32 %v1588_v5, %v1500_v4  ;;  %v1414_v13 = vadd.f32 %v1413_v10, %v1325_v45  ;;  %1363 = vmatmul.bf16.gmra.mxu0 %v3670_v2  ;;  %v2856_v4 = vld [vmem:[#allocation10 + $0x90] sm:$0xf]  ;;  %v3001_v5 = vld [vmem:[#allocation10 + $0x94] sm:$0xf0] }
 0x1ef   : > { %1452 = vmatmul.bf16.gmra.mxu1 %v3678_v20  ;;  %v2857_v45 = vor.u32 %v3001_v5, %v2856_v4  ;;  %1966 = vmatpush.bf16.msra.mxu0 %v2793_v3  ;;  %v2784_v5 = vld [vmem:[#allocation10] sm:$0xf] }
 0x1f0   : > { %v1669_v42 = vmax.f32 %v1589_v11, 0.0  ;;  %1541 = vmatmul.bf16.gmra.mxu2 %v3670_v2  ;;  %v1670_v15 = vmax.f32 %v1414_v13, 0.0 }
 0x1f1   : > { %1630 = vmatmul.bf16.gmra.mxu3 %v3678_v20  ;;  %2055 = vmatpush.bf16.msra.mxu1 %v2857_v45 }
 0x1f2   : > { %v3769_v61 = vpack.c.bf16 %v1669_v42, %v1667_v14 }
 0x1f3   : > { %v1502_v17 = vpop.f32.mrf.mxu2  ;;  %v1326_v56 = vpop.f32.mrf.mxu0 }
 0x1f4   : > { %v1503_v19 = vadd.f32 %v1502_v17, %v3754_v9  ;;  %v1591_v21 = vpop.f32.mrf.mxu3  ;;  %v1327_v12 = vadd.f32 %v1326_v56, %v3745_v50  ;;  %v1415_v23 = vpop.f32.mrf.mxu1 }
 0x1f6   : > { %v1592_v25 = vadd.f32 %v1591_v21, %v1503_v19  ;;  %v1416_v27 = vadd.f32 %v1415_v23, %v1327_v12 }
 0x1f8   : > { %v1672_v60 = vmax.f32 %v1416_v27, 0.0  ;;  %v1671_v37 = vmax.f32 %v1592_v25, 0.0 }
 0x1fa   : > { %v3773_v30 = vpack.c.bf16 %v1672_v60, %v1670_v15 }
 0x1fb   : > { %v1504_v8 = vpop.f32.mrf.mxu2  ;;  %v1329_v31 = vpop.f32.mrf.mxu0 }
 0x1fc   : > { %v1505_v2 = vadd.f32 %v1504_v8, %v3754_v9  ;;  %v1593_v20 = vpop.f32.mrf.mxu3  ;;  %v1330_v33 = vadd.f32 %v1329_v31, %v3745_v50  ;;  %v1418_v24 = vpop.f32.mrf.mxu1 }
 0x1fe   : > { %v1594_v22 = vadd.f32 %v1593_v20, %v1505_v2  ;;  %v1419_v34 = vadd.f32 %v1418_v24, %v1330_v33  ;;  %1368 = vmatmul.bf16.gmra.mxu0 %v3682_v43 }
 0x1ff   : > { %1457 = vmatmul.bf16.gmra.mxu1 %v3690_v57 }
 0x200   : > { %v1673_v38 = vmax.f32 %v1594_v22, 0.0  ;;  %1546 = vmatmul.bf16.gmra.mxu2 %v3682_v43  ;;  %v1674_v59 = vmax.f32 %v1419_v34, 0.0 }
 0x201   : > { %1635 = vmatmul.bf16.gmra.mxu3 %v3690_v57 }
 0x202   : > { %v3781_v36 = vpack.c.bf16 %v1673_v38, %v1671_v37 }
 0x203   : > { %v1507_v47 = vpop.f32.mrf.mxu2  ;;  %v1331_v54 = vpop.f32.mrf.mxu0 }
 0x204   : > { %v1508_v49 = vadd.f32 %v1507_v47, %v3754_v9  ;;  %v1596_v52 = vpop.f32.mrf.mxu3  ;;  %v1332_v55 = vadd.f32 %v1331_v54, %v3745_v50  ;;  %v1420_v58 = vpop.f32.mrf.mxu1  ;;  %v2982_v47 = vld [vmem:[#allocation10 + $0x4] sm:$0xf]  ;;  %v2850_v54 = vld [vmem:[#allocation10 + $0x88] sm:$0xf0] }
 0x206   : > { %v1597_v43 = vadd.f32 %v1596_v52, %v1508_v49  ;;  %v1421_v57 = vadd.f32 %v1420_v58, %v1332_v55  ;;  %v2789_v49 = vor.u32 %v2982_v47, %v2786_v48  ;;  %v2998_v52 = vld [vmem:[#allocation10 + $0x84] sm:$0xf] }
 0x208   : > { %v1676_v62 = vmax.f32 %v1421_v57, 0.0  ;;  %v1675_v56 = vmax.f32 %v1597_v43, 0.0  ;;  %v2853_v43 = vor.u32 %v2998_v52, %v2850_v54  ;;  %2145 = vmatpush.bf16.msra.mxu2 %v2789_v49 }
 0x20a   : > { %v3785_v10 = vpack.c.bf16 %v1676_v62, %v1674_v59  ;;  %2234 = vmatpush.bf16.msra.mxu3 %v2853_v43 }
 0x20b   : > { %v1509_v6 = vpop.f32.mrf.mxu2  ;;  %v1334_v14 = vpop.f32.mrf.mxu0 }
 0x20c   : > { %v1510_v11 = vadd.f32 %v1509_v6, %v3754_v9  ;;  %v1598_v13 = vpop.f32.mrf.mxu3  ;;  %v1335_v42 = vadd.f32 %v1334_v14, %v3745_v50  ;;  %v1423_v17 = vpop.f32.mrf.mxu1  ;;  %v2983_v6 = vld [vmem:[#allocation10 + $0x4] sm:$0xf0] }
 0x20d   : > { %v2785_v45 = vor.u32 %v2983_v6, %v2784_v5 }
 0x20e   : > { %v1599_v19 = vadd.f32 %v1598_v13, %v1510_v11  ;;  %v1424_v21 = vadd.f32 %v1423_v17, %v1335_v42  ;;  %1373 = vmatmul.bf16.gmra.mxu0 %v3694_v7  ;;  %v2848_v11 = vld [vmem:[#allocation10 + $0x80] sm:$0xf]  ;;  %v2999_v13 = vld [vmem:[#allocation10 + $0x84] sm:$0xf0] }
 0x20f   : > { %1462 = vmatmul.bf16.gmra.mxu1 %v3702_v26  ;;  %v2849_v42 = vor.u32 %v2999_v13, %v2848_v11  ;;  %1967 = vmatpush.bf16.msra.mxu0 %v2785_v45 }
 0x210   : > { %v1677_v12 = vmax.f32 %v1599_v19, 0.0  ;;  %1551 = vmatmul.bf16.gmra.mxu2 %v3694_v7  ;;  %v1678_v33 = vmax.f32 %v1424_v21, 0.0 }
 0x211   : > { %1640 = vmatmul.bf16.gmra.mxu3 %v3702_v26  ;;  %2056 = vmatpush.bf16.msra.mxu1 %v2849_v42 }
 0x212   : > { %v3793_v23 = vpack.c.bf16 %v1677_v12, %v1675_v56 }
 0x213   : > { %v1512_v25 = vpop.f32.mrf.mxu2  ;;  %v1336_v60 = vpop.f32.mrf.mxu0 }
 0x214   : > { %v1513_v27 = vadd.f32 %v1512_v25, %v3754_v9  ;;  %v1601_v15 = vpop.f32.mrf.mxu3  ;;  %v1337_v8 = vadd.f32 %v1336_v60, %v3745_v50  ;;  %v1425_v2 = vpop.f32.mrf.mxu1 }
 0x216   : > { %v1602_v20 = vadd.f32 %v1601_v15, %v1513_v27  ;;  %v1426_v31 = vadd.f32 %v1425_v2, %v1337_v8 }
 0x218   : > { %v1680_v24 = vmax.f32 %v1426_v31, 0.0  ;;  %v1679_v44 = vmax.f32 %v1602_v20, 0.0 }
 0x21a   : > { %v3797_v34 = vpack.c.bf16 %v1680_v24, %v1678_v33 }
 0x21b   : > { %v1514_v22 = vpop.f32.mrf.mxu2  ;;  %v1339_v37 = vpop.f32.mrf.mxu0 }
 0x21c   : > { %v1515_v7 = vadd.f32 %v1514_v22, %v3754_v9  ;;  %v1603_v26 = vpop.f32.mrf.mxu3  ;;  %v1340_v38 = vadd.f32 %v1339_v37, %v3745_v50  ;;  %v1428_v29 = vpop.f32.mrf.mxu1 }
 0x21e   : > { %v1604_v41 = vadd.f32 %v1603_v26, %v1515_v7  ;;  %v1429_v40 = vadd.f32 %v1428_v29, %v1340_v38  ;;  %1378 = vmatmul.bf16.gmra.mxu0 %v3706_v51 }
 0x21f   : > { %1467 = vmatmul.bf16.gmra.mxu1 %v3714_v18 }
 0x220   : > { %v1681_v46 = vmax.f32 %v1604_v41, 0.0  ;;  %1556 = vmatmul.bf16.gmra.mxu2 %v3706_v51  ;;  %v1682_v3 = vmax.f32 %v1429_v40, 0.0 }
 0x221   : > { %1645 = vmatmul.bf16.gmra.mxu3 %v3714_v18 }
 0x222   : > { %v3805_v55 = vpack.c.bf16 %v1681_v46, %v1679_v44 }
 0x223   : > { %v1517_v58 = vpop.f32.mrf.mxu2  ;;  %v1341_v62 = vpop.f32.mrf.mxu0 }
 0x224   : > { %v1518_v57 = vadd.f32 %v1517_v58, %v3754_v9  ;;  %v1606_v59 = vpop.f32.mrf.mxu3  ;;  %v1342_v63 = vadd.f32 %v1341_v62, %v3745_v50  ;;  %v1430_v35 = vpop.f32.mrf.mxu1 }
 0x226   : > { %v1607_v51 = vadd.f32 %v1606_v59, %v1518_v57  ;;  %v1431_v18 = vadd.f32 %v1430_v35, %v1342_v63 }
 0x228   : > { %v1684_v4 = vmax.f32 %v1431_v18, 0.0  ;;  %v1683_v60 = vmax.f32 %v1607_v51, 0.0 }
 0x22a   : > { %v3809_v17 = vpack.c.bf16 %v1684_v4, %v1682_v3 }
 0x22b   : > { %v1519_v14 = vpop.f32.mrf.mxu2  ;;  %v1344_v56 = vpop.f32.mrf.mxu0 }
 0x22c   : > { %v1520_v19 = vadd.f32 %v1519_v14, %v3754_v9  ;;  %v1608_v21 = vpop.f32.mrf.mxu3  ;;  %v1345_v12 = vadd.f32 %v1344_v56, %v3745_v50  ;;  %v1433_v25 = vpop.f32.mrf.mxu1 }
 0x22e   : > { %v1609_v27 = vadd.f32 %v1608_v21, %v1520_v19  ;;  %v1434_v15 = vadd.f32 %v1433_v25, %v1345_v12  ;;  %1383 = vmatmul.bf16.gmra.mxu0 %v3718_v16 }
 0x22f   : > { %1472 = vmatmul.bf16.gmra.mxu1 %v3726_v32 }
 0x230   : > { %v1685_v8 = vmax.f32 %v1609_v27, 0.0  ;;  %1561 = vmatmul.bf16.gmra.mxu2 %v3718_v16  ;;  %v1686_v38 = vmax.f32 %v1434_v15, 0.0 }
 0x231   : > { %1650 = vmatmul.bf16.gmra.mxu3 %v3726_v32 }
 0x232   : > { %v3817_v2 = vpack.c.bf16 %v1685_v8, %v1683_v60 }
 0x233   : > { %v1522_v20 = vpop.f32.mrf.mxu2  ;;  %v1346_v24 = vpop.f32.mrf.mxu0 }
 0x234   : > { %v1523_v31 = vadd.f32 %v1522_v20, %v3754_v9  ;;  %v1611_v33 = vpop.f32.mrf.mxu3  ;;  %v1347_v22 = vadd.f32 %v1346_v24, %v3745_v50  ;;  %v1435_v7 = vpop.f32.mrf.mxu1 }
 0x236   : > { %v1612_v26 = vadd.f32 %v1611_v33, %v1523_v31  ;;  %v1436_v37 = vadd.f32 %v1435_v7, %v1347_v22 }
 0x238   : > { %v1688_v29 = vmax.f32 %v1436_v37, 0.0  ;;  %v1687_v52 = vmax.f32 %v1612_v26, 0.0 }
 0x23a   : > { %v3821_v40 = vpack.c.bf16 %v1688_v29, %v1686_v38 }
 0x23b   : > { %v1524_v41 = vpop.f32.mrf.mxu2  ;;  %v1349_v44 = vpop.f32.mrf.mxu0 }
 0x23c   : > { %v1525_v16 = vadd.f32 %v1524_v41, %v3754_v9  ;;  %v1613_v32 = vpop.f32.mrf.mxu3  ;;  %v1350_v46 = vadd.f32 %v1349_v44, %v3745_v50  ;;  %v1438_v47 = vpop.f32.mrf.mxu1 }
 0x23e   : > { %v1614_v48 = vadd.f32 %v1613_v32, %v1525_v16  ;;  %v1439_v49 = vadd.f32 %v1438_v47, %v1350_v46  ;;  %1388 = vmatmul.bf16.gmra.mxu0 %v3730_v53 }
 0x23f   : > { %1477 = vmatmul.bf16.gmra.mxu1 %v3738_v28 }
 0x240   : > { %v1689_v54 = vmax.f32 %v1614_v48, 0.0  ;;  %1566 = vmatmul.bf16.gmra.mxu2 %v3730_v53  ;;  %v1690_v3 = vmax.f32 %v1439_v49, 0.0 }
 0x241   : > { %1655 = vmatmul.bf16.gmra.mxu3 %v3738_v28 }
 0x242   : > { %v3829_v58 = vpack.c.bf16 %v1689_v54, %v1687_v52 }
 0x243   : > { %v1527_v43 = vpop.f32.mrf.mxu2  ;;  %v1351_v62 = vpop.f32.mrf.mxu0 }
 0x244   : > { %v1528_v57 = vadd.f32 %v1527_v43, %v3754_v9  ;;  %v1616_v59 = vpop.f32.mrf.mxu3  ;;  %v1352_v63 = vadd.f32 %v1351_v62, %v3745_v50  ;;  %v1440_v35 = vpop.f32.mrf.mxu1 }
 0x246   : > { %v1617_v51 = vadd.f32 %v1616_v59, %v1528_v57  ;;  %v1441_v18 = vadd.f32 %v1440_v35, %v1352_v63 }
 0x248   : > { %v1692_v4 = vmax.f32 %v1441_v18, 0.0  ;;  %v1691_v19 = vmax.f32 %v1617_v51, 0.0 }
 0x24a   : > { %v3833_v6 = vpack.c.bf16 %v1692_v4, %v1690_v3 }
 0x24b   : > { %v1529_v5 = vpop.f32.mrf.mxu2  ;;  %v1354_v45 = vpop.f32.mrf.mxu0 }
 0x24c   : > { %v1530_v53 = vadd.f32 %v1529_v5, %v3754_v9  ;;  %v1618_v28 = vpop.f32.mrf.mxu3  ;;  %v1355_v11 = vadd.f32 %v1354_v45, %v3745_v50  ;;  %v1443_v13 = vpop.f32.mrf.mxu1 }
 0x24e   : > { %v1619_v14 = vadd.f32 %v1618_v28, %v1530_v53  ;;  %v1444_v42 = vadd.f32 %v1443_v13, %v1355_v11  ;;  %1393 = vmatmul.bf16.gmra.mxu0 %v3747_v0 }
 0x24f   : > { %1482 = vmatmul.bf16.gmra.mxu1 %v3757_v39 }
 0x250   : > { %v1693_v21 = vmax.f32 %v1619_v14, 0.0  ;;  %1571 = vmatmul.bf16.gmra.mxu2 %v3747_v0  ;;  %v1694_v33 = vmax.f32 %v1444_v42, 0.0 }
 0x251   : > { %1660 = vmatmul.bf16.gmra.mxu3 %v3757_v39 }
 0x252   : > { %v3841_v56 = vpack.c.bf16 %v1693_v21, %v1691_v19 }
 0x253   : > { %v1532_v12 = vpop.f32.mrf.mxu2  ;;  %v1356_v15 = vpop.f32.mrf.mxu0 }
 0x254   : > { %v1533_v25 = vadd.f32 %v1532_v12, %v3754_v9  ;;  %v1621_v27 = vpop.f32.mrf.mxu3  ;;  %v1357_v60 = vadd.f32 %v1356_v15, %v3745_v50  ;;  %v1445_v8 = vpop.f32.mrf.mxu1 }
 0x256   : > { %v1622_v20 = vadd.f32 %v1621_v27, %v1533_v25  ;;  %v1446_v31 = vadd.f32 %v1445_v8, %v1357_v60 }
 0x258   : > { %v1696_v24 = vmax.f32 %v1446_v31, 0.0  ;;  %v1695_v16 = vmax.f32 %v1622_v20, 0.0 }
 0x25a   : > { %v3845_v7 = vpack.c.bf16 %v1696_v24, %v1694_v33 }
 0x25b   : > { %v1534_v22 = vpop.f32.mrf.mxu2  ;;  %v1359_v26 = vpop.f32.mrf.mxu0 }
 0x25c   : > { %v1535_v0 = vadd.f32 %v1534_v22, %v3754_v9  ;;  %v1623_v39 = vpop.f32.mrf.mxu3  ;;  %v1360_v37 = vadd.f32 %v1359_v26, %v3745_v50  ;;  %v1448_v38 = vpop.f32.mrf.mxu1 }
 0x25e   : > { %v1624_v29 = vadd.f32 %v1623_v39, %v1535_v0  ;;  %v1449_v41 = vadd.f32 %v1448_v38, %v1360_v37  ;;  %1968 = vmatmul.bf16.vlgmr.msra.gmra.mxu0 %v3761_v1 }
 0x25f   : > { %2057 = vmatmul.bf16.vlgmr.msra.gmra.mxu1 %v3769_v61 }
 0x260   : > { %v1697_v32 = vmax.f32 %v1624_v29, 0.0  ;;  %2146 = vmatmul.bf16.vlgmr.msra.gmra.mxu2 %v3761_v1  ;;  %v1698_v59 = vmax.f32 %v1449_v41, 0.0 }
 0x261   : > { %2235 = vmatmul.bf16.vlgmr.msra.gmra.mxu3 %v3769_v61 }
 0x262   : > { %v3853_v44 = vpack.c.bf16 %v1697_v32, %v1695_v16 }
 0x263   : > { %v1537_v46 = vpop.f32.mrf.mxu2  ;;  %v1361_v49 = vpop.f32.mrf.mxu0 }
 0x264   : > { %v1538_v47 = vadd.f32 %v1537_v46, %v3754_v9  ;;  %v1626_v48 = vpop.f32.mrf.mxu3  ;;  %v1362_v52 = vadd.f32 %v1361_v49, %v3745_v50  ;;  %v1450_v54 = vpop.f32.mrf.mxu1 }
 0x266   : > { %v1627_v43 = vadd.f32 %v1626_v48, %v1538_v47  ;;  %v1451_v57 = vadd.f32 %v1450_v54, %v1362_v52 }
 0x268   : > { %v1700_v62 = vmax.f32 %v1451_v57, 0.0  ;;  %v1699_v53 = vmax.f32 %v1627_v43, 0.0 }
 0x26a   : > { %v3857_v35 = vpack.c.bf16 %v1700_v62, %v1698_v59 }
 0x26b   : > { %v1539_v63 = vpop.f32.mrf.mxu2  ;;  %v1364_v51 = vpop.f32.mrf.mxu0 }
 0x26c   : > { %v1540_v1 = vadd.f32 %v1539_v63, %v3754_v9  ;;  %v1628_v61 = vpop.f32.mrf.mxu3  ;;  %v1365_v18 = vadd.f32 %v1364_v51, %v3745_v50  ;;  %v1453_v3 = vpop.f32.mrf.mxu1 }
 0x26e   : > { %v1629_v4 = vadd.f32 %v1628_v61, %v1540_v1  ;;  %v1454_v5 = vadd.f32 %v1453_v3, %v1365_v18  ;;  %1973 = vmatmul.bf16.gmra.mxu0 %v3773_v30 }
 0x26f   : > { %2062 = vmatmul.bf16.gmra.mxu1 %v3781_v36 }
 0x270   : > { %v1701_v28 = vmax.f32 %v1629_v4, 0.0  ;;  %2151 = vmatmul.bf16.gmra.mxu2 %v3773_v30  ;;  %v1702_v27 = vmax.f32 %v1454_v5, 0.0 }
 0x271   : > { %2240 = vmatmul.bf16.gmra.mxu3 %v3781_v36 }
 0x272   : > { %v3865_v45 = vpack.c.bf16 %v1701_v28, %v1699_v53 }
 0x273   : > { %v1542_v11 = vpop.f32.mrf.mxu2  ;;  %v1366_v42 = vpop.f32.mrf.mxu0 }
 0x274   : > { %v1543_v13 = vadd.f32 %v1542_v11, %v3754_v9  ;;  %v1631_v14 = vpop.f32.mrf.mxu3  ;;  %v1367_v19 = vadd.f32 %v1366_v42, %v3745_v50  ;;  %v1455_v21 = vpop.f32.mrf.mxu1 }
 0x276   : > { %v1632_v12 = vadd.f32 %v1631_v14, %v1543_v13  ;;  %v1456_v25 = vadd.f32 %v1455_v21, %v1367_v19 }
 0x278   : > { %v1704_v15 = vmax.f32 %v1456_v25, 0.0  ;;  %v1703_v0 = vmax.f32 %v1632_v12, 0.0 }
 0x27a   : > { %v3869_v8 = vpack.c.bf16 %v1704_v15, %v1702_v27 }
 0x27b   : > { %v1544_v60 = vpop.f32.mrf.mxu2  ;;  %v1369_v20 = vpop.f32.mrf.mxu0 }
 0x27c   : > { %v1545_v30 = vadd.f32 %v1544_v60, %v3754_v9  ;;  %v1633_v36 = vpop.f32.mrf.mxu3  ;;  %v1370_v31 = vadd.f32 %v1369_v20, %v3745_v50  ;;  %v1458_v33 = vpop.f32.mrf.mxu1 }
 0x27e   : > { %v1634_v24 = vadd.f32 %v1633_v36, %v1545_v30  ;;  %v1459_v22 = vadd.f32 %v1458_v33, %v1370_v31  ;;  %1978 = vmatmul.bf16.gmra.mxu0 %v3785_v10 }
 0x27f   : > { %2067 = vmatmul.bf16.gmra.mxu1 %v3793_v23 }
 0x280   : > { %v1705_v39 = vmax.f32 %v1634_v24, 0.0  ;;  %2156 = vmatmul.bf16.gmra.mxu2 %v3785_v10  ;;  %v1706_v48 = vmax.f32 %v1459_v22, 0.0 }
 0x281   : > { %2245 = vmatmul.bf16.gmra.mxu3 %v3793_v23 }
 0x282   : > { %v3877_v26 = vpack.c.bf16 %v1705_v39, %v1703_v0 }
 0x283   : > { %v1547_v37 = vpop.f32.mrf.mxu2  ;;  %v1371_v41 = vpop.f32.mrf.mxu0 }
 0x284   : > { %v1548_v38 = vadd.f32 %v1547_v37, %v3754_v9  ;;  %v1636_v29 = vpop.f32.mrf.mxu3  ;;  %v1372_v16 = vadd.f32 %v1371_v41, %v3745_v50  ;;  %v1460_v32 = vpop.f32.mrf.mxu1 }
 0x286   : > { %v1637_v46 = vadd.f32 %v1636_v29, %v1548_v38  ;;  %v1461_v47 = vadd.f32 %v1460_v32, %v1372_v16 }
 0x288   : > { %v1708_v49 = vmax.f32 %v1461_v47, 0.0  ;;  %v1707_v1 = vmax.f32 %v1637_v46, 0.0 }
 0x28a   : > { %v3881_v54 = vpack.c.bf16 %v1708_v49, %v1706_v48 }
 0x28b   : > { %v1549_v52 = vpop.f32.mrf.mxu2  ;;  %v1374_v43 = vpop.f32.mrf.mxu0 }
 0x28c   : > { %v1550_v10 = vadd.f32 %v1549_v52, %v3754_v9  ;;  %v1638_v23 = vpop.f32.mrf.mxu3  ;;  %v1375_v57 = vadd.f32 %v1374_v43, %v3745_v50  ;;  %v1463_v59 = vpop.f32.mrf.mxu1 }
 0x28e   : > { %v1639_v62 = vadd.f32 %v1638_v23, %v1550_v10  ;;  %v1464_v63 = vadd.f32 %v1463_v59, %v1375_v57  ;;  %1983 = vmatmul.bf16.gmra.mxu0 %v3797_v34 }
 0x28f   : > { %2072 = vmatmul.bf16.gmra.mxu1 %v3805_v55 }
 0x290   : > { %v1709_v61 = vmax.f32 %v1639_v62, 0.0  ;;  %2161 = vmatmul.bf16.gmra.mxu2 %v3797_v34  ;;  %v1710_v14 = vmax.f32 %v1464_v63, 0.0 }
 0x291   : > { %2250 = vmatmul.bf16.gmra.mxu3 %v3805_v55 }
 0x292   : > { %v3889_v51 = vpack.c.bf16 %v1709_v61, %v1707_v1 }
 0x293   : > { %v1552_v18 = vpop.f32.mrf.mxu2  ;;  %v1376_v5 = vpop.f32.mrf.mxu0 }
 0x294   : > { %v1553_v3 = vadd.f32 %v1552_v18, %v3754_v9  ;;  %v1641_v4 = vpop.f32.mrf.mxu3  ;;  %v1377_v53 = vadd.f32 %v1376_v5, %v3745_v50  ;;  %v1465_v28 = vpop.f32.mrf.mxu1 }
 0x296   : > { %v1642_v11 = vadd.f32 %v1641_v4, %v1553_v3  ;;  %v1466_v13 = vadd.f32 %v1465_v28, %v1377_v53 }
 0x298   : > { %v1712_v42 = vmax.f32 %v1466_v13, 0.0  ;;  %v1711_v30 = vmax.f32 %v1642_v11, 0.0 }
 0x29a   : > { %v3893_v21 = vpack.c.bf16 %v1712_v42, %v1710_v14 }
 0x29b   : > { %v1554_v19 = vpop.f32.mrf.mxu2  ;;  %v1379_v12 = vpop.f32.mrf.mxu0 }
 0x29c   : > { %v1555_v34 = vadd.f32 %v1554_v19, %v3754_v9  ;;  %v1643_v55 = vpop.f32.mrf.mxu3  ;;  %v1380_v25 = vadd.f32 %v1379_v12, %v3745_v50  ;;  %v1468_v27 = vpop.f32.mrf.mxu1 }
 0x29e   : > { %v1644_v15 = vadd.f32 %v1643_v55, %v1555_v34  ;;  %v1469_v60 = vadd.f32 %v1468_v27, %v1380_v25  ;;  %1988 = vmatmul.bf16.gmra.mxu0 %v3809_v17 }
 0x29f   : > { %2077 = vmatmul.bf16.gmra.mxu1 %v3817_v2 }
 0x2a0   : > { %v1713_v36 = vmax.f32 %v1644_v15, 0.0  ;;  %2166 = vmatmul.bf16.gmra.mxu2 %v3809_v17  ;;  %v1714_v29 = vmax.f32 %v1469_v60, 0.0 }
 0x2a1   : > { %2255 = vmatmul.bf16.gmra.mxu3 %v3817_v2 }
 0x2a2   : > { %v3901_v20 = vpack.c.bf16 %v1713_v36, %v1711_v30 }
 0x2a3   : > { %v1557_v31 = vpop.f32.mrf.mxu2  ;;  %v1381_v22 = vpop.f32.mrf.mxu0 }
 0x2a4   : > { %v1558_v33 = vadd.f32 %v1557_v31, %v3754_v9  ;;  %v1646_v24 = vpop.f32.mrf.mxu3  ;;  %v1382_v0 = vadd.f32 %v1381_v22, %v3745_v50  ;;  %v1470_v39 = vpop.f32.mrf.mxu1 }
 0x2a6   : > { %v1647_v37 = vadd.f32 %v1646_v24, %v1558_v33  ;;  %v1471_v38 = vadd.f32 %v1470_v39, %v1382_v0 }
 0x2a8   : > { %v1716_v41 = vmax.f32 %v1471_v38, 0.0  ;;  %v1715_v10 = vmax.f32 %v1647_v37, 0.0 }
 0x2aa   : > { %v3905_v32 = vpack.c.bf16 %v1716_v41, %v1714_v29 }
 0x2ab   : > { %v1559_v16 = vpop.f32.mrf.mxu2  ;;  %v1384_v46 = vpop.f32.mrf.mxu0 }
 0x2ac   : > { %v1560_v17 = vadd.f32 %v1559_v16, %v3754_v9  ;;  %v1648_v2 = vpop.f32.mrf.mxu3  ;;  %v1385_v47 = vadd.f32 %v1384_v46, %v3745_v50  ;;  %v1473_v48 = vpop.f32.mrf.mxu1 }
 0x2ae   : > { %v1649_v49 = vadd.f32 %v1648_v2, %v1560_v17  ;;  %v1474_v52 = vadd.f32 %v1473_v48, %v1385_v47  ;;  %1993 = vmatmul.bf16.gmra.mxu0 %v3821_v40 }
 0x2af   : > { %2082 = vmatmul.bf16.gmra.mxu1 %v3829_v58 }
 0x2b0   : > { %v1717_v23 = vmax.f32 %v1649_v49, 0.0  ;;  %2171 = vmatmul.bf16.gmra.mxu2 %v3821_v40  ;;  %v1718_v4 = vmax.f32 %v1474_v52, 0.0 }
 0x2b1   : > { %2260 = vmatmul.bf16.gmra.mxu3 %v3829_v58 }
 0x2b2   : > { %v3913_v43 = vpack.c.bf16 %v1717_v23, %v1715_v10 }
 0x2b3   : > { %v1562_v57 = vpop.f32.mrf.mxu2  ;;  %v1386_v63 = vpop.f32.mrf.mxu0 }
 0x2b4   : > { %v1563_v59 = vadd.f32 %v1562_v57, %v3754_v9  ;;  %v1651_v62 = vpop.f32.mrf.mxu3  ;;  %v1387_v1 = vadd.f32 %v1386_v63, %v3745_v50  ;;  %v1475_v61 = vpop.f32.mrf.mxu1 }
 0x2b6   : > { %v1652_v18 = vadd.f32 %v1651_v62, %v1563_v59  ;;  %v1476_v3 = vadd.f32 %v1475_v61, %v1387_v1  ;;  %v1794_v59 = vld [vmem:[%s4157_s6] sm:$0x3] }
 0x2b7   : > { %v3944_v1 = vperm.slane %v1794_v59, 0 }
 0x2b8   : > { %v1720_v5 = vmax.f32 %v1476_v3, 0.0  ;;  %v1719_v34 = vmax.f32 %v1652_v18, 0.0 }
 0x2ba   : > { %v3917_v28 = vpack.c.bf16 %v1720_v5, %v1718_v4 }
 0x2bb   : > { %v1564_v53 = vpop.f32.mrf.mxu2  ;;  %v1389_v11 = vpop.f32.mrf.mxu0 }
 0x2bc   : > { %v1565_v40 = vadd.f32 %v1564_v53, %v3754_v9  ;;  %v1653_v58 = vpop.f32.mrf.mxu3  ;;  %v1390_v13 = vadd.f32 %v1389_v11, %v3745_v50  ;;  %v1478_v14 = vpop.f32.mrf.mxu1 }
 0x2be   : > { %v1654_v42 = vadd.f32 %v1653_v58, %v1565_v40  ;;  %v1479_v19 = vadd.f32 %v1478_v14, %v1390_v13  ;;  %1998 = vmatmul.bf16.gmra.mxu0 %v3833_v6  ;;  %v3953_v13 = vperm.slane %v1794_v59, 1 }
 0x2bf   : > { %2087 = vmatmul.bf16.gmra.mxu1 %v3841_v56 }
 0x2c0   : > { %v1721_v55 = vmax.f32 %v1654_v42, 0.0  ;;  %2176 = vmatmul.bf16.gmra.mxu2 %v3833_v6  ;;  %v1722_v24 = vmax.f32 %v1479_v19, 0.0 }
 0x2c1   : > { %2265 = vmatmul.bf16.gmra.mxu3 %v3841_v56 }
 0x2c2   : > { %v3925_v12 = vpack.c.bf16 %v1721_v55, %v1719_v34 }
 0x2c3   : > { %v1567_v25 = vpop.f32.mrf.mxu2  ;;  %v1391_v60 = vpop.f32.mrf.mxu0 }
 0x2c4   : > { %v1568_v27 = vadd.f32 %v1567_v25, %v3754_v9  ;;  %v1656_v15 = vpop.f32.mrf.mxu3  ;;  %v1392_v30 = vadd.f32 %v1391_v60, %v3745_v50  ;;  %v1480_v36 = vpop.f32.mrf.mxu1 }
 0x2c6   : > { %v1657_v31 = vadd.f32 %v1656_v15, %v1568_v27  ;;  %v1481_v33 = vadd.f32 %v1480_v36, %v1392_v30 }
 0x2c8   : > { %v1724_v22 = vmax.f32 %v1481_v33, 0.0  ;;  %v1723_v17 = vmax.f32 %v1657_v31, 0.0 }
 0x2ca   : > { %v3929_v39 = vpack.c.bf16 %v1724_v22, %v1722_v24 }
 0x2cb   : > { %v1569_v0 = vpop.f32.mrf.mxu2  ;;  %v1394_v37 = vpop.f32.mrf.mxu0 }
 0x2cc   : > { %v1570_v6 = vadd.f32 %v1569_v0, %v3754_v9  ;;  %v1658_v56 = vpop.f32.mrf.mxu3  ;;  %v1395_v38 = vadd.f32 %v1394_v37, %v3745_v50  ;;  %v1483_v29 = vpop.f32.mrf.mxu1 }
 0x2ce   : > { %v1659_v41 = vadd.f32 %v1658_v56, %v1570_v6  ;;  %v1484_v16 = vadd.f32 %v1483_v29, %v1395_v38  ;;  %2003 = vmatmul.bf16.gmra.mxu0 %v3845_v7 }
 0x2cf   : > { %2092 = vmatmul.bf16.gmra.mxu1 %v3853_v44 }
 0x2d0   : > { %v1725_v2 = vmax.f32 %v1659_v41, 0.0  ;;  %2181 = vmatmul.bf16.gmra.mxu2 %v3845_v7  ;;  %v1726_v63 = vmax.f32 %v1484_v16, 0.0 }
 0x2d1   : > { %2270 = vmatmul.bf16.gmra.mxu3 %v3853_v44 }
 0x2d2   : > { %v3937_v46 = vpack.c.bf16 %v1725_v2, %v1723_v17 }
 0x2d3   : > { %v1572_v47 = vpop.f32.mrf.mxu2  ;;  %v1396_v52 = vpop.f32.mrf.mxu0 }
 0x2d4   : > { %v1573_v48 = vadd.f32 %v1572_v47, %v3754_v9  ;;  %v1661_v49 = vpop.f32.mrf.mxu3  ;;  %v1397_v10 = vadd.f32 %v1396_v52, %v3745_v50  ;;  %v1485_v23 = vpop.f32.mrf.mxu1 }
 0x2d6   : > { %v1662_v57 = vadd.f32 %v1661_v49, %v1573_v48  ;;  %v1486_v62 = vadd.f32 %v1485_v23, %v1397_v10 }
 0x2d8   : > { %v1728_v7 = vmax.f32 %v1486_v62, 0.0  ;;  %v1727_v58 = vmax.f32 %v1662_v57, 0.0 }
 0x2da   : > { %v3946_v61 = vpack.c.bf16 %v1728_v7, %v1726_v63 }
 0x2db   : > { %v1574_v44 = vpop.f32.mrf.mxu2  ;;  %v1969_v4 = vpop.f32.mrf.mxu0 }
 0x2dc   : > { %v1575_v18 = vadd.f32 %v1574_v44, %v3754_v9  ;;  %v1663_v3 = vpop.f32.mrf.mxu3  ;;  %v1970_v50 = vadd.f32 %v1969_v4, %v3944_v1  ;;  %v2058_v5 = vpop.f32.mrf.mxu1 }
 0x2de   : > { %v1664_v53 = vadd.f32 %v1663_v3, %v1575_v18  ;;  %v2059_v40 = vadd.f32 %v2058_v5, %v1970_v50  ;;  %2008 = vmatmul.bf16.gmra.mxu0 %v3857_v35 }
 0x2df   : > { %2097 = vmatmul.bf16.gmra.mxu1 %v3865_v45 }
 0x2e0   : > { %v1729_v11 = vmax.f32 %v1664_v53, 0.0  ;;  %2186 = vmatmul.bf16.gmra.mxu2 %v3857_v35  ;;  %2316 = vst [vmem:[%s3957_s21] sm:$0xff] %v2059_v40 }
 0x2e1   : > { %2275 = vmatmul.bf16.gmra.mxu3 %v3865_v45 }
 0x2e2   : > { %v3961_v9 = vpack.c.bf16 %v1729_v11, %v1727_v58 }
 0x2e3   : > { %v2147_v14 = vpop.f32.mrf.mxu2  ;;  %v1971_v34 = vpop.f32.mrf.mxu0 }
 0x2e4   : > { %v2148_v42 = vadd.f32 %v2147_v14, %v3953_v13  ;;  %v2236_v19 = vpop.f32.mrf.mxu3  ;;  %v1972_v35 = vadd.f32 %v1971_v34, %v3944_v1  ;;  %v2060_v55 = vpop.f32.mrf.mxu1 }
 0x2e6   : > { %v2237_v25 = vadd.f32 %v2236_v19, %v2148_v42  ;;  %v2061_v27 = vadd.f32 %v2060_v55, %v1972_v35 }
 0x2e8   : > { %2317 = vst [vmem:[%s3957_s21 + $0x8] sm:$0xff] %v2237_v25 }
 0x2e9   : > { %2318 = vst [vmem:[%s3957_s21 + $0x10] sm:$0xff] %v2061_v27 }
 0x2eb   : > { %v2149_v15 = vpop.f32.mrf.mxu2  ;;  %v1974_v30 = vpop.f32.mrf.mxu0 }
 0x2ec   : > { %v2150_v60 = vadd.f32 %v2149_v15, %v3953_v13  ;;  %v2238_v45 = vpop.f32.mrf.mxu3  ;;  %v1975_v36 = vadd.f32 %v1974_v30, %v3944_v1  ;;  %v2063_v31 = vpop.f32.mrf.mxu1 }
 0x2ee   : > { %v2239_v33 = vadd.f32 %v2238_v45, %v2150_v60  ;;  %v2064_v24 = vadd.f32 %v2063_v31, %v1975_v36  ;;  %2013 = vmatmul.bf16.gmra.mxu0 %v3869_v8 }
 0x2ef   : > { %2102 = vmatmul.bf16.gmra.mxu1 %v3877_v26 }
 0x2f0   : > { %2319 = vst [vmem:[%s3957_s21 + $0x18] sm:$0xff] %v2239_v33  ;;  %2191 = vmatmul.bf16.gmra.mxu2 %v3869_v8 }
 0x2f1   : > { %2320 = vst [vmem:[%s3957_s21 + $0x20] sm:$0xff] %v2064_v24  ;;  %2280 = vmatmul.bf16.gmra.mxu3 %v3877_v26 }
 0x2f3   : > { %v2152_v22 = vpop.f32.mrf.mxu2  ;;  %v1976_v56 = vpop.f32.mrf.mxu0 }
 0x2f4   : > { %v2153_v0 = vadd.f32 %v2152_v22, %v3953_v13  ;;  %v2241_v6 = vpop.f32.mrf.mxu3  ;;  %v1977_v37 = vadd.f32 %v1976_v56, %v3944_v1  ;;  %v2065_v38 = vpop.f32.mrf.mxu1 }
 0x2f6   : > { %v2242_v29 = vadd.f32 %v2241_v6, %v2153_v0  ;;  %v2066_v41 = vadd.f32 %v2065_v38, %v1977_v37 }
 0x2f8   : > { %2321 = vst [vmem:[%s3957_s21 + $0x28] sm:$0xff] %v2242_v29 }
 0x2f9   : > { %2322 = vst [vmem:[%s3957_s21 + $0x30] sm:$0xff] %v2066_v41 }
 0x2fb   : > { %v2154_v16 = vpop.f32.mrf.mxu2  ;;  %v1979_v2 = vpop.f32.mrf.mxu0 }
 0x2fc   : > { %v2155_v8 = vadd.f32 %v2154_v16, %v3953_v13  ;;  %v2243_v17 = vpop.f32.mrf.mxu3  ;;  %v1980_v26 = vadd.f32 %v1979_v2, %v3944_v1  ;;  %v2068_v47 = vpop.f32.mrf.mxu1 }
 0x2fe   : > { %v2244_v48 = vadd.f32 %v2243_v17, %v2155_v8  ;;  %v2069_v49 = vadd.f32 %v2068_v47, %v1980_v26  ;;  %2018 = vmatmul.bf16.gmra.mxu0 %v3881_v54 }
 0x2ff   : > { %2107 = vmatmul.bf16.gmra.mxu1 %v3889_v51 }
 0x300   : > { %2323 = vst [vmem:[%s3957_s21 + $0x38] sm:$0xff] %v2244_v48  ;;  %2196 = vmatmul.bf16.gmra.mxu2 %v3881_v54 }
 0x301   : > { %2324 = vst [vmem:[%s3957_s21 + $0x40] sm:$0xff] %v2069_v49  ;;  %2285 = vmatmul.bf16.gmra.mxu3 %v3889_v51 }
 0x303   : > { %v2157_v52 = vpop.f32.mrf.mxu2  ;;  %v1981_v57 = vpop.f32.mrf.mxu0 }
 0x304   : > { %v2158_v10 = vadd.f32 %v2157_v52, %v3953_v13  ;;  %v2246_v23 = vpop.f32.mrf.mxu3  ;;  %v1982_v59 = vadd.f32 %v1981_v57, %v3944_v1  ;;  %v2070_v62 = vpop.f32.mrf.mxu1 }
 0x306   : > { %v2247_v63 = vadd.f32 %v2246_v23, %v2158_v10  ;;  %v2071_v7 = vadd.f32 %v2070_v62, %v1982_v59 }
 0x308   : > { %2325 = vst [vmem:[%s3957_s21 + $0x48] sm:$0xff] %v2247_v63 }
 0x309   : > { %2326 = vst [vmem:[%s3957_s21 + $0x50] sm:$0xff] %v2071_v7 }
 0x30b   : > { %v2159_v44 = vpop.f32.mrf.mxu2  ;;  %v1984_v3 = vpop.f32.mrf.mxu0 }
 0x30c   : > { %v2160_v54 = vadd.f32 %v2159_v44, %v3953_v13  ;;  %v2248_v18 = vpop.f32.mrf.mxu3  ;;  %v1985_v51 = vadd.f32 %v1984_v3, %v3944_v1  ;;  %v2073_v4 = vpop.f32.mrf.mxu1 }
 0x30e   : > { %v2249_v50 = vadd.f32 %v2248_v18, %v2160_v54  ;;  %v2074_v5 = vadd.f32 %v2073_v4, %v1985_v51  ;;  %2023 = vmatmul.bf16.gmra.mxu0 %v3893_v21 }
 0x30f   : > { %2112 = vmatmul.bf16.gmra.mxu1 %v3901_v20 }
 0x310   : > { %2327 = vst [vmem:[%s3957_s21 + $0x58] sm:$0xff] %v2249_v50  ;;  %2201 = vmatmul.bf16.gmra.mxu2 %v3893_v21 }
 0x311   : > { %2328 = vst [vmem:[%s3957_s21 + $0x60] sm:$0xff] %v2074_v5  ;;  %2290 = vmatmul.bf16.gmra.mxu3 %v3901_v20 }
 0x313   : > { %v2162_v53 = vpop.f32.mrf.mxu2  ;;  %v1986_v11 = vpop.f32.mrf.mxu0 }
 0x314   : > { %v2163_v40 = vadd.f32 %v2162_v53, %v3953_v13  ;;  %v2251_v58 = vpop.f32.mrf.mxu3  ;;  %v1987_v14 = vadd.f32 %v1986_v11, %v3944_v1  ;;  %v2075_v42 = vpop.f32.mrf.mxu1 }
 0x316   : > { %v2252_v19 = vadd.f32 %v2251_v58, %v2163_v40  ;;  %v2076_v34 = vadd.f32 %v2075_v42, %v1987_v14 }
 0x318   : > { %2329 = vst [vmem:[%s3957_s21 + $0x68] sm:$0xff] %v2252_v19 }
 0x319   : > { %2330 = vst [vmem:[%s3957_s21 + $0x70] sm:$0xff] %v2076_v34 }
 0x31b   : > { %v2164_v35 = vpop.f32.mrf.mxu2  ;;  %v1989_v25 = vpop.f32.mrf.mxu0 }
 0x31c   : > { %v2165_v21 = vadd.f32 %v2164_v35, %v3953_v13  ;;  %v2253_v55 = vpop.f32.mrf.mxu3  ;;  %v1990_v20 = vadd.f32 %v1989_v25, %v3944_v1  ;;  %v2078_v27 = vpop.f32.mrf.mxu1 }
 0x31e   : > { %v2254_v15 = vadd.f32 %v2253_v55, %v2165_v21  ;;  %v2079_v60 = vadd.f32 %v2078_v27, %v1990_v20  ;;  %2028 = vmatmul.bf16.gmra.mxu0 %v3905_v32 }
 0x31f   : > { %2117 = vmatmul.bf16.gmra.mxu1 %v3913_v43 }
 0x320   : > { %2331 = vst [vmem:[%s3957_s21 + $0x78] sm:$0xff] %v2254_v15  ;;  %2206 = vmatmul.bf16.gmra.mxu2 %v3905_v32 }
 0x321   : > { %2332 = vst [vmem:[%s3957_s21 + $0x80] sm:$0xff] %v2079_v60  ;;  %2295 = vmatmul.bf16.gmra.mxu3 %v3913_v43 }
 0x323   : > { %v2167_v45 = vpop.f32.mrf.mxu2  ;;  %v1991_v31 = vpop.f32.mrf.mxu0 }
 0x324   : > { %v2168_v30 = vadd.f32 %v2167_v45, %v3953_v13  ;;  %v2256_v36 = vpop.f32.mrf.mxu3  ;;  %v1992_v33 = vadd.f32 %v1991_v31, %v3944_v1  ;;  %v2080_v24 = vpop.f32.mrf.mxu1 }
 0x326   : > { %v2257_v22 = vadd.f32 %v2256_v36, %v2168_v30  ;;  %v2081_v0 = vadd.f32 %v2080_v24, %v1992_v33 }
 0x328   : > { %2333 = vst [vmem:[%s3957_s21 + $0x88] sm:$0xff] %v2257_v22 }
 0x329   : > { %2334 = vst [vmem:[%s3957_s21 + $0x90] sm:$0xff] %v2081_v0 }
 0x32b   : > { %v2169_v6 = vpop.f32.mrf.mxu2  ;;  %v1994_v37 = vpop.f32.mrf.mxu0 }
 0x32c   : > { %v2170_v32 = vadd.f32 %v2169_v6, %v3953_v13  ;;  %v2258_v56 = vpop.f32.mrf.mxu3  ;;  %v1995_v43 = vadd.f32 %v1994_v37, %v3944_v1  ;;  %v2083_v38 = vpop.f32.mrf.mxu1 }
 0x32e   : > { %v2259_v29 = vadd.f32 %v2258_v56, %v2170_v32  ;;  %v2084_v41 = vadd.f32 %v2083_v38, %v1995_v43  ;;  %2033 = vmatmul.bf16.gmra.mxu0 %v3917_v28 }
 0x32f   : > { %2122 = vmatmul.bf16.gmra.mxu1 %v3925_v12 }
 0x330   : > { %2335 = vst [vmem:[%s3957_s21 + $0x98] sm:$0xff] %v2259_v29  ;;  %2211 = vmatmul.bf16.gmra.mxu2 %v3917_v28 }
 0x331   : > { %2336 = vst [vmem:[%s3957_s21 + $0xa0] sm:$0xff] %v2084_v41  ;;  %2300 = vmatmul.bf16.gmra.mxu3 %v3925_v12 }
 0x333   : > { %v2172_v16 = vpop.f32.mrf.mxu2  ;;  %v1996_v2 = vpop.f32.mrf.mxu0 }
 0x334   : > { %v2173_v8 = vadd.f32 %v2172_v16, %v3953_v13  ;;  %v2261_v17 = vpop.f32.mrf.mxu3  ;;  %v1997_v26 = vadd.f32 %v1996_v2, %v3944_v1  ;;  %v2085_v47 = vpop.f32.mrf.mxu1 }
 0x336   : > { %v2262_v48 = vadd.f32 %v2261_v17, %v2173_v8  ;;  %v2086_v49 = vadd.f32 %v2085_v47, %v1997_v26 }
 0x338   : > { %2337 = vst [vmem:[%s3957_s21 + $0xa8] sm:$0xff] %v2262_v48 }
 0x339   : > { %2338 = vst [vmem:[%s3957_s21 + $0xb0] sm:$0xff] %v2086_v49 }
 0x33b   : > { %v2174_v52 = vpop.f32.mrf.mxu2  ;;  %v1999_v23 = vpop.f32.mrf.mxu0 }
 0x33c   : > { %v2175_v28 = vadd.f32 %v2174_v52, %v3953_v13  ;;  %v2263_v10 = vpop.f32.mrf.mxu3  ;;  %v2000_v12 = vadd.f32 %v1999_v23, %v3944_v1  ;;  %v2088_v57 = vpop.f32.mrf.mxu1 }
 0x33e   : > { %v2264_v59 = vadd.f32 %v2263_v10, %v2175_v28  ;;  %v2089_v62 = vadd.f32 %v2088_v57, %v2000_v12  ;;  %2038 = vmatmul.bf16.gmra.mxu0 %v3929_v39 }
 0x33f   : > { %2127 = vmatmul.bf16.gmra.mxu1 %v3937_v46 }
 0x340   : > { %2339 = vst [vmem:[%s3957_s21 + $0xb8] sm:$0xff] %v2264_v59  ;;  %2216 = vmatmul.bf16.gmra.mxu2 %v3929_v39 }
 0x341   : > { %2340 = vst [vmem:[%s3957_s21 + $0xc0] sm:$0xff] %v2089_v62  ;;  %2305 = vmatmul.bf16.gmra.mxu3 %v3937_v46 }
 0x343   : > { %v2177_v63 = vpop.f32.mrf.mxu2  ;;  %v2001_v54 = vpop.f32.mrf.mxu0 }
 0x344   : > { %v2178_v7 = vadd.f32 %v2177_v63, %v3953_v13  ;;  %v2266_v44 = vpop.f32.mrf.mxu3  ;;  %v2002_v18 = vadd.f32 %v2001_v54, %v3944_v1  ;;  %v2090_v3 = vpop.f32.mrf.mxu1 }
 0x346   : > { %v2267_v51 = vadd.f32 %v2266_v44, %v2178_v7  ;;  %v2091_v4 = vadd.f32 %v2090_v3, %v2002_v18 }
 0x348   : > { %2341 = vst [vmem:[%s3957_s21 + $0xc8] sm:$0xff] %v2267_v51 }
 0x349   : > { %2342 = vst [vmem:[%s3957_s21 + $0xd0] sm:$0xff] %v2091_v4 }
 0x34b   : > { %v2179_v50 = vpop.f32.mrf.mxu2  ;;  %v2004_v53 = vpop.f32.mrf.mxu0 }
 0x34c   : > { %v2180_v39 = vadd.f32 %v2179_v50, %v3953_v13  ;;  %v2268_v5 = vpop.f32.mrf.mxu3  ;;  %v2005_v46 = vadd.f32 %v2004_v53, %v3944_v1  ;;  %v2093_v40 = vpop.f32.mrf.mxu1 }
 0x34e   : > { %v2269_v58 = vadd.f32 %v2268_v5, %v2180_v39  ;;  %v2094_v11 = vadd.f32 %v2093_v40, %v2005_v46  ;;  %2043 = vmatmul.bf16.gmra.mxu0 %v3946_v61 }
 0x34f   : > { %2132 = vmatmul.bf16.gmra.mxu1 %v3961_v9 }
 0x350   : > { %2343 = vst [vmem:[%s3957_s21 + $0xd8] sm:$0xff] %v2269_v58  ;;  %2221 = vmatmul.bf16.gmra.mxu2 %v3946_v61 }
 0x351   : > { %2344 = vst [vmem:[%s3957_s21 + $0xe0] sm:$0xff] %v2094_v11  ;;  %2310 = vmatmul.bf16.gmra.mxu3 %v3961_v9 }
 0x353   : > { %v2182_v14 = vpop.f32.mrf.mxu2  ;;  %v2006_v34 = vpop.f32.mrf.mxu0 }
 0x354   : > { %v2183_v42 = vadd.f32 %v2182_v14, %v3953_v13  ;;  %v2271_v19 = vpop.f32.mrf.mxu3  ;;  %v2007_v35 = vadd.f32 %v2006_v34, %v3944_v1  ;;  %v2095_v21 = vpop.f32.mrf.mxu1 }
 0x356   : > { %v2272_v55 = vadd.f32 %v2271_v19, %v2183_v42  ;;  %v2096_v25 = vadd.f32 %v2095_v21, %v2007_v35 }
 0x358   : > { %2345 = vst [vmem:[%s3957_s21 + $0xe8] sm:$0xff] %v2272_v55 }
 0x359   : > { %2346 = vst [vmem:[%s3957_s21 + $0xf0] sm:$0xff] %v2096_v25 }
 0x35b   : > { %v2184_v20 = vpop.f32.mrf.mxu2  ;;  %v2009_v9 = vpop.f32.mrf.mxu0 }
 0x35c   : > { %v2185_v61 = vadd.f32 %v2184_v20, %v3953_v13  ;;  %v2273_v27 = vpop.f32.mrf.mxu3  ;;  %v2010_v15 = vadd.f32 %v2009_v9, %v3944_v1  ;;  %v2098_v60 = vpop.f32.mrf.mxu1 }
 0x35e   : > { %v2274_v45 = vadd.f32 %v2273_v27, %v2185_v61  ;;  %v2099_v30 = vadd.f32 %v2098_v60, %v2010_v15 }
 0x360   : > { %2347 = vst [vmem:[%s3957_s21 + $0xf8] sm:$0xff] %v2274_v45 }
 0x361   : > { %2348 = vst [vmem:[%s3957_s21 + $0x100] sm:$0xff] %v2099_v30 }
 0x363   : > { %v2187_v36 = vpop.f32.mrf.mxu2  ;;  %v2011_v24 = vpop.f32.mrf.mxu0 }
 0x364   : > { %v2188_v31 = vadd.f32 %v2187_v36, %v3953_v13  ;;  %v2276_v33 = vpop.f32.mrf.mxu3  ;;  %v2012_v22 = vadd.f32 %v2011_v24, %v3944_v1  ;;  %v2100_v0 = vpop.f32.mrf.mxu1 }
 0x366   : > { %v2277_v6 = vadd.f32 %v2276_v33, %v2188_v31  ;;  %v2101_v32 = vadd.f32 %v2100_v0, %v2012_v22 }
 0x368   : > { %2349 = vst [vmem:[%s3957_s21 + $0x108] sm:$0xff] %v2277_v6 }
 0x369   : > { %2350 = vst [vmem:[%s3957_s21 + $0x110] sm:$0xff] %v2101_v32 }
 0x36b   : > { %v2189_v56 = vpop.f32.mrf.mxu2  ;;  %v2014_v38 = vpop.f32.mrf.mxu0 }
 0x36c   : > { %v2190_v37 = vadd.f32 %v2189_v56, %v3953_v13  ;;  %v2278_v43 = vpop.f32.mrf.mxu3  ;;  %v2015_v29 = vadd.f32 %v2014_v38, %v3944_v1  ;;  %v2103_v41 = vpop.f32.mrf.mxu1 }
 0x36e   : > { %v2279_v16 = vadd.f32 %v2278_v43, %v2190_v37  ;;  %v2104_v8 = vadd.f32 %v2103_v41, %v2015_v29 }
 0x370   : > { %2351 = vst [vmem:[%s3957_s21 + $0x118] sm:$0xff] %v2279_v16 }
 0x371   : > { %2352 = vst [vmem:[%s3957_s21 + $0x120] sm:$0xff] %v2104_v8 }
 0x373   : > { %v2192_v17 = vpop.f32.mrf.mxu2  ;;  %v2016_v47 = vpop.f32.mrf.mxu0 }
 0x374   : > { %v2193_v2 = vadd.f32 %v2192_v17, %v3953_v13  ;;  %v2281_v26 = vpop.f32.mrf.mxu3  ;;  %v2017_v48 = vadd.f32 %v2016_v47, %v3944_v1  ;;  %v2105_v49 = vpop.f32.mrf.mxu1 }
 0x376   : > { %v2282_v52 = vadd.f32 %v2281_v26, %v2193_v2  ;;  %v2106_v28 = vadd.f32 %v2105_v49, %v2017_v48 }
 0x378   : > { %2353 = vst [vmem:[%s3957_s21 + $0x128] sm:$0xff] %v2282_v52 }
 0x379   : > { %2354 = vst [vmem:[%s3957_s21 + $0x130] sm:$0xff] %v2106_v28 }
 0x37b   : > { %v2194_v10 = vpop.f32.mrf.mxu2  ;;  %v2019_v57 = vpop.f32.mrf.mxu0 }
 0x37c   : > { %v2195_v23 = vadd.f32 %v2194_v10, %v3953_v13  ;;  %v2283_v12 = vpop.f32.mrf.mxu3  ;;  %v2020_v59 = vadd.f32 %v2019_v57, %v3944_v1  ;;  %v2108_v62 = vpop.f32.mrf.mxu1 }
 0x37e   : > { %v2284_v63 = vadd.f32 %v2283_v12, %v2195_v23  ;;  %v2109_v7 = vadd.f32 %v2108_v62, %v2020_v59 }
 0x380   : > { %2355 = vst [vmem:[%s3957_s21 + $0x138] sm:$0xff] %v2284_v63 }
 0x381   : > { %2356 = vst [vmem:[%s3957_s21 + $0x140] sm:$0xff] %v2109_v7 }
 0x383   : > { %v2197_v44 = vpop.f32.mrf.mxu2  ;;  %v2021_v3 = vpop.f32.mrf.mxu0 }
 0x384   : > { %v2198_v54 = vadd.f32 %v2197_v44, %v3953_v13  ;;  %v2286_v18 = vpop.f32.mrf.mxu3  ;;  %v2022_v51 = vadd.f32 %v2021_v3, %v3944_v1  ;;  %v2110_v4 = vpop.f32.mrf.mxu1 }
 0x386   : > { %v2287_v50 = vadd.f32 %v2286_v18, %v2198_v54  ;;  %v2111_v39 = vadd.f32 %v2110_v4, %v2022_v51 }
 0x388   : > { %2357 = vst [vmem:[%s3957_s21 + $0x148] sm:$0xff] %v2287_v50 }
 0x389   : > { %2358 = vst [vmem:[%s3957_s21 + $0x150] sm:$0xff] %v2111_v39 }
 0x38b   : > { %v2199_v5 = vpop.f32.mrf.mxu2  ;;  %v2024_v40 = vpop.f32.mrf.mxu0 }
 0x38c   : > { %v2200_v53 = vadd.f32 %v2199_v5, %v3953_v13  ;;  %v2288_v46 = vpop.f32.mrf.mxu3  ;;  %v2025_v58 = vadd.f32 %v2024_v40, %v3944_v1  ;;  %v2113_v11 = vpop.f32.mrf.mxu1 }
 0x38e   : > { %v2289_v14 = vadd.f32 %v2288_v46, %v2200_v53  ;;  %v2114_v42 = vadd.f32 %v2113_v11, %v2025_v58 }
 0x390   : > { %2359 = vst [vmem:[%s3957_s21 + $0x158] sm:$0xff] %v2289_v14 }
 0x391   : > { %2360 = vst [vmem:[%s3957_s21 + $0x160] sm:$0xff] %v2114_v42 }
 0x393   : > { %v2202_v19 = vpop.f32.mrf.mxu2  ;;  %v2026_v21 = vpop.f32.mrf.mxu0 }
 0x394   : > { %v2203_v34 = vadd.f32 %v2202_v19, %v3953_v13  ;;  %v2291_v35 = vpop.f32.mrf.mxu3  ;;  %v2027_v55 = vadd.f32 %v2026_v21, %v3944_v1  ;;  %v2115_v25 = vpop.f32.mrf.mxu1 }
 0x396   : > { %v2292_v20 = vadd.f32 %v2291_v35, %v2203_v34  ;;  %v2116_v61 = vadd.f32 %v2115_v25, %v2027_v55 }
 0x398   : > { %2361 = vst [vmem:[%s3957_s21 + $0x168] sm:$0xff] %v2292_v20 }
 0x399   : > { %2362 = vst [vmem:[%s3957_s21 + $0x170] sm:$0xff] %v2116_v61 }
 0x39b   : > { %v2204_v27 = vpop.f32.mrf.mxu2  ;;  %v2029_v60 = vpop.f32.mrf.mxu0 }
 0x39c   : > { %v2205_v9 = vadd.f32 %v2204_v27, %v3953_v13  ;;  %v2293_v15 = vpop.f32.mrf.mxu3  ;;  %v2030_v45 = vadd.f32 %v2029_v60, %v3944_v1  ;;  %v2118_v30 = vpop.f32.mrf.mxu1 }
 0x39e   : > { %v2294_v36 = vadd.f32 %v2293_v15, %v2205_v9  ;;  %v2119_v31 = vadd.f32 %v2118_v30, %v2030_v45 }
 0x3a0   : > { %2363 = vst [vmem:[%s3957_s21 + $0x178] sm:$0xff] %v2294_v36 }
 0x3a1   : > { %2364 = vst [vmem:[%s3957_s21 + $0x180] sm:$0xff] %v2119_v31 }
 0x3a3   : > { %v2207_v33 = vpop.f32.mrf.mxu2  ;;  %v2031_v0 = vpop.f32.mrf.mxu0 }
 0x3a4   : > { %v2208_v24 = vadd.f32 %v2207_v33, %v3953_v13  ;;  %v2296_v22 = vpop.f32.mrf.mxu3  ;;  %v2032_v6 = vadd.f32 %v2031_v0, %v3944_v1  ;;  %v2120_v32 = vpop.f32.mrf.mxu1 }
 0x3a6   : > { %v2297_v56 = vadd.f32 %v2296_v22, %v2208_v24  ;;  %v2121_v37 = vadd.f32 %v2120_v32, %v2032_v6 }
 0x3a8   : > { %2365 = vst [vmem:[%s3957_s21 + $0x188] sm:$0xff] %v2297_v56 }
 0x3a9   : > { %2366 = vst [vmem:[%s3957_s21 + $0x190] sm:$0xff] %v2121_v37 }
 0x3ab   : > { %v2209_v43 = vpop.f32.mrf.mxu2  ;;  %v2034_v41 = vpop.f32.mrf.mxu0 }
 0x3ac   : > { %v2210_v38 = vadd.f32 %v2209_v43, %v3953_v13  ;;  %v2298_v29 = vpop.f32.mrf.mxu3  ;;  %v2035_v16 = vadd.f32 %v2034_v41, %v3944_v1  ;;  %v2123_v8 = vpop.f32.mrf.mxu1 }
 0x3ae   : > { %v2299_v17 = vadd.f32 %v2298_v29, %v2210_v38  ;;  %v2124_v2 = vadd.f32 %v2123_v8, %v2035_v16 }
 0x3b0   : > { %2367 = vst [vmem:[%s3957_s21 + $0x198] sm:$0xff] %v2299_v17 }
 0x3b1   : > { %2368 = vst [vmem:[%s3957_s21 + $0x1a0] sm:$0xff] %v2124_v2 }
 0x3b3   : > { %v2212_v26 = vpop.f32.mrf.mxu2  ;;  %v2036_v49 = vpop.f32.mrf.mxu0 }
 0x3b4   : > { %v2213_v47 = vadd.f32 %v2212_v26, %v3953_v13  ;;  %v2301_v48 = vpop.f32.mrf.mxu3  ;;  %v2037_v52 = vadd.f32 %v2036_v49, %v3944_v1  ;;  %v2125_v28 = vpop.f32.mrf.mxu1 }
 0x3b6   : > { %v2302_v10 = vadd.f32 %v2301_v48, %v2213_v47  ;;  %v2126_v23 = vadd.f32 %v2125_v28, %v2037_v52 }
 0x3b8   : > { %2369 = vst [vmem:[%s3957_s21 + $0x1a8] sm:$0xff] %v2302_v10 }
 0x3b9   : > { %2370 = vst [vmem:[%s3957_s21 + $0x1b0] sm:$0xff] %v2126_v23 }
 0x3bb   : > { %v2214_v12 = vpop.f32.mrf.mxu2  ;;  %v2039_v62 = vpop.f32.mrf.mxu0 }
 0x3bc   : > { %v2215_v57 = vadd.f32 %v2214_v12, %v3953_v13  ;;  %v2303_v59 = vpop.f32.mrf.mxu3  ;;  %v2040_v63 = vadd.f32 %v2039_v62, %v3944_v1  ;;  %v2128_v7 = vpop.f32.mrf.mxu1 }
 0x3be   : > { %v2304_v44 = vadd.f32 %v2303_v59, %v2215_v57  ;;  %v2129_v54 = vadd.f32 %v2128_v7, %v2040_v63 }
 0x3c0   : > { %2371 = vst [vmem:[%s3957_s21 + $0x1b8] sm:$0xff] %v2304_v44 }
 0x3c1   : > { %2372 = vst [vmem:[%s3957_s21 + $0x1c0] sm:$0xff] %v2129_v54 }
 0x3c3   : > { %v2217_v18 = vpop.f32.mrf.mxu2  ;;  %v2041_v4 = vpop.f32.mrf.mxu0 }
 0x3c4   : > { %v2218_v3 = vadd.f32 %v2217_v18, %v3953_v13  ;;  %v2306_v51 = vpop.f32.mrf.mxu3  ;;  %v2042_v50 = vadd.f32 %v2041_v4, %v3944_v1  ;;  %v2130_v39 = vpop.f32.mrf.mxu1 }
 0x3c6   : > { %v2307_v5 = vadd.f32 %v2306_v51, %v2218_v3  ;;  %v2131_v53 = vadd.f32 %v2130_v39, %v2042_v50 }
 0x3c8   : > { %2373 = vst [vmem:[%s3957_s21 + $0x1c8] sm:$0xff] %v2307_v5 }
 0x3c9   : > { %2374 = vst [vmem:[%s3957_s21 + $0x1d0] sm:$0xff] %v2131_v53 }
 0x3cb   : > { %v2219_v46 = vpop.f32.mrf.mxu2  ;;  %v2044_v11 = vpop.f32.mrf.mxu0 }
 0x3cc   : > { %v2220_v40 = vadd.f32 %v2219_v46, %v3953_v13  ;;  %v2308_v58 = vpop.f32.mrf.mxu3  ;;  %v2045_v14 = vadd.f32 %v2044_v11, %v3944_v1  ;;  %v2133_v42 = vpop.f32.mrf.mxu1 }
 0x3ce   : > { %v2309_v19 = vadd.f32 %v2308_v58, %v2220_v40  ;;  %v2134_v34 = vadd.f32 %v2133_v42, %v2045_v14 }
 0x3d0   : > { %2375 = vst [vmem:[%s3957_s21 + $0x1d8] sm:$0xff] %v2309_v19 }
 0x3d1   : > { %2376 = vst [vmem:[%s3957_s21 + $0x1e0] sm:$0xff] %v2134_v34 }
 0x3d3   : > { %v2222_v35 = vpop.f32.mrf.mxu2  ;;  %v2046_v25 = vpop.f32.mrf.mxu0 }
 0x3d4   : > { %v2223_v21 = vadd.f32 %v2222_v35, %v3953_v13  ;;  %v2311_v55 = vpop.f32.mrf.mxu3  ;;  %v2047_v20 = vadd.f32 %v2046_v25, %v3944_v1  ;;  %v2135_v27 = vpop.f32.mrf.mxu1 }
 0x3d6   : > { %v2312_v61 = vadd.f32 %v2311_v55, %v2223_v21  ;;  %v2136_v9 = vadd.f32 %v2135_v27, %v2047_v20 }
 0x3d8   : > { %2377 = vst [vmem:[%s3957_s21 + $0x1e8] sm:$0xff] %v2312_v61 }
 0x3d9   : > { %2378 = vst [vmem:[%s3957_s21 + $0x1f0] sm:$0xff] %v2136_v9 }
 0x3db   : > { %v2224_v15 = vpop.f32.mrf.mxu2 }
 0x3dc   : > { %v2225_v60 = vadd.f32 %v2224_v15, %v3953_v13  ;;  %v2313_v45 = vpop.f32.mrf.mxu3 }
 0x3de   : > { %v2314_v1 = vadd.f32 %v2313_v45, %v2225_v60 }
 0x3e0   : > { %2379 = vst [vmem:[%s3957_s21 + $0x1f8] sm:$0xff] %v2314_v1 }
 0x3e1   : > { %3286 = shalt.err (!%p3283_p10)
}
 0x3e2   : > { %s3343_s19 = smov 256   ;;  %s3344_s21 = smov 16  }
 0x3e3   : > { %3034 = dma.vmem_to_hbm [thread:$0]  (%p3469_p3), %s2395_s10, 8192, %s2397_s14, %s2381_s28, %s3343_s19, %s3343_s19, %s3344_s21  }
 0x3e4 PF: > { %s2411_s22 = sand.u32 1, %s3321_s24   ;;  %p4167_p12 = scmp.ge.s32.totalorder %s3333_s27, 2 }
 0x3e5   : > { %s2412_s20 = scalar_lea.sflag [#allocation4], %s2411_s22 }
 0x3e6   : > { %p3054_p13 = pnand %p4167_p12, %p3420_p6 }
 0x3e8   : > { %p3055_p0 = pneg %p3054_p13 }
 0x3ea   : > { %3316 = dma.done.wait (%p3055_p0), %s2412_s20, 8192  }
 0x3eb   : > { %3318 = vsyncadd (%p3055_p0), %s2412_s20, 4294959104  ;;  %p22_p5 = scmp.ge.s32.totalorder %s3459_s18, 4   ;;  %s4168_s24 = smov %s3325_s25 }
 0x3ec   : > { %s4169_s25 = smov %s3329_s26  ;;  %s4170_s26 = smov %s3475_s9 }
 0x3ed   : > { %s4171_s27 = smov %s3459_s18  ;;  %24 = sbr.rel (!%p22_p5) target bundleno = 9 (0x9), region = 109 }
 0x3f2   :  { %2418 = vsyncpa [#allocation3], 1 }
 0x3f3   :  { %2420 = vsyncpa [#allocation3 + $0x1], 1 }
 0x3f4   :  { %2421 = vsyncpa [#allocation6], 1 }
 0x3f5   :  { %2422 = vsyncpa [#allocation9], 1 }
 0x3f6   :  { %2423 = vsyncpa [#allocation4], 1 }
 0x3f7   :  { %2425 = vsyncpa [#allocation4 + $0x1], 1 }

</bundles_post_ra>
